<compile_context>
chip_gen: v6e
topology: v6e:2x2x1
jax: 0.10.0
libtpu: 0.0.40
codegen_flags: <defaults>
</compile_context>

<pallas_src>
import functools

import jax
import jax.numpy as jnp
from jax.experimental import pallas as pl
from jax.experimental.pallas import tpu as pltpu


STATE_DIM = 206   # 200 firm features + 6 sector features
FIRM_F = 200
SECTOR_F = 6


def _round_up(x, m):
    return ((x + m - 1) // m) * m


# Merged-bias layout: every segment starts at a 128-lane-aligned offset so the
# in-kernel static slices are cheap.
_BIAS_SEGMENTS = (
    ("b1", 544),      # fb1 (512) || sb1 (32)  — fused layer-1 bias
    ("fb2", 256), ("fb3", 128),
    ("sb2", 32), ("sb3", 16),
    ("cb1", 8), ("cb2", 8),
    ("shb1", 256), ("shb2", 256),
    ("mb1", 256), ("mb_out", 2),
)


def _bias_layout():
    slots, off = {}, 0
    for name, n in _BIAS_SEGMENTS:
        slots[name] = (off, n)
        off += _round_up(n, 128)
    return slots, off


_BIAS_SLOT, _BIAS_TOTAL = _bias_layout()


# ----------------------------------------------------------------------------
# Kernel
# ----------------------------------------------------------------------------
def sac_actor_kernel(
    # activations (one batch tile each)
    state_ref,        # [TM, 206] bf16
    prev_ref,         # [TM, 206] bf16
    chi_ref,          # [TM, 1]   f32
    # fused firm+sector layer 1 (N = 512 + 32 = 544)
    w1_s, w1_p,       # [206, 544] bf16 (state / prev operands)
    w1_c,             # [1, 544]   f32  (chi column, zero in first 512 cols)
    # firm branch tail: 512 -> 256 -> 128
    fw2, fw3,
    # sector branch tail: 32 -> 32 -> 16
    sw2, sw3,
    # chi embedding: 1 -> 8 -> 8 (both layers on the VPU)
    cw1, cw2,         # [1,8] f32, [8,8] f32
    # shared trunk: firm(128) + [sector(16)||chi(8)] -> 256 -> 256
    shwf, shwsc, shw2,
    # mu/logstd head: 256 -> 256 -> 2
    mw1, mw_out,
    # all biases merged (128-aligned slots)
    bias_ref,         # [1, _BIAS_TOTAL] f32
    # output
    out_ref,          # [TM, 2] f32: col 0 = mu, col 1 = clipped logstd
):
    relu = lambda x: jnp.maximum(x, 0.0)

    def b(name):
        off, n = _BIAS_SLOT[name]
        return bias_ref[:, off:off + n]

    def bdot(a, w_ref):
        # bf16 x bf16 MXU matmul, f32 accumulation.
        return jnp.dot(a.astype(jnp.bfloat16), w_ref[...],
                       preferred_element_type=jnp.float32)

    state = state_ref[...]          # bf16
    prev = prev_ref[...]            # bf16
    chi = chi_ref[...]              # f32 [TM, 1]

    # ---- fused firm-L1 + sector-L1 (one pair of K=206 dots, N=544) ----------
    h544 = relu(jnp.dot(state, w1_s[...], preferred_element_type=jnp.float32)
                + jnp.dot(prev, w1_p[...], preferred_element_type=jnp.float32)
                + chi * w1_c[...] + b("b1"))                           # [TM,544]
    firm_h = h544[:, :512]
    sector_h = h544[:, 512:544]

    # ---- firm branch tail ----------------------------------------------------
    h = relu(bdot(firm_h, fw2) + b("fb2"))                             # [TM,256]
    firm_out = relu(bdot(h, fw3) + b("fb3"))                           # [TM,128]

    # ---- sector branch tail --------------------------------------------------
    h = relu(bdot(sector_h, sw2) + b("sb2"))                           # [TM,32]
    sector_out = relu(bdot(h, sw3) + b("sb3"))                         # [TM,16]

    # ---- chi embedding (pure VPU: K=1 broadcast, then unrolled 8x8 FMA) ------
    chi_h = relu(chi * cw1[...] + b("cb1"))                            # [TM,8]
    cw2v = cw2[...]                                                    # [8,8] f32
    acc8 = chi_h[:, 0:1] * cw2v[0:1, :]
    for k in range(1, 8):
        acc8 = acc8 + chi_h[:, k:k + 1] * cw2v[k:k + 1, :]
    chi_emb = relu(acc8 + b("cb2"))                                    # [TM,8]

    # ---- shared trunk (firm K=128 dot + fused K=24 dot) ----------------------
    sc24 = jnp.concatenate([sector_out, chi_emb], axis=1)              # [TM,24]
    h = relu(bdot(firm_out, shwf) + bdot(sc24, shwsc) + b("shb1"))     # [TM,256]
    shared = relu(bdot(h, shw2) + b("shb2"))                           # [TM,256]

    # ---- fused mu / logstd head ----------------------------------------------
    h = relu(bdot(shared, mw1) + b("mb1"))                             # [TM,256]
    head = bdot(h, mw_out) + b("mb_out")                               # [TM,2]
    col = jax.lax.broadcasted_iota(jnp.int32, head.shape, 1)
    out_ref[...] = jnp.where(col == 1, jnp.clip(head, -20.0, 2.0), head)


# ----------------------------------------------------------------------------
# Parameters: canonical PyTorch-equivalent init, then kernel packing
# ----------------------------------------------------------------------------
def _linear_params(key, fan_in, fan_out):
    kw, kb = jax.random.split(key)
    bound = 1.0 / float(fan_in) ** 0.5
    w = jax.random.uniform(kw, (fan_in, fan_out), jnp.float32, -bound, bound)
    b = jax.random.uniform(kb, (1, fan_out), jnp.float32, -bound, bound)
    return w, b


def init_sac_actor_params(key):
    """Canonical params (weights pre-transposed to [in, out], f32)."""
    ks = jax.random.split(key, 12)
    p = {}
    p["fw1"], p["fb1"] = _linear_params(ks[0], 400, 512)
    p["fw2"], p["fb2"] = _linear_params(ks[1], 512, 256)
    p["fw3"], p["fb3"] = _linear_params(ks[2], 256, 128)
    p["sw1"], p["sb1"] = _linear_params(ks[3], 13, 32)
    p["sw2"], p["sb2"] = _linear_params(ks[4], 32, 32)
    p["sw3"], p["sb3"] = _linear_params(ks[5], 32, 16)
    p["cw1"], p["cb1"] = _linear_params(ks[6], 1, 8)
    p["cw2"], p["cb2"] = _linear_params(ks[7], 8, 8)
    p["shw1"], p["shb1"] = _linear_params(ks[8], 152, 256)
    p["shw2"], p["shb2"] = _linear_params(ks[9], 256, 256)
    p["mw1"], p["mb1"] = _linear_params(ks[10], 256, 256)
    p["mw2"], p["mb2"] = _linear_params(ks[11], 256, 2)
    return p


def pack_params_for_kernel(p, weight_dtype=jnp.bfloat16):
    """Split / pad / fuse / cast canonical params into the kernel tuple."""
    w = lambda x: x.astype(weight_dtype)

    # Fused layer 1: firm Linear(400,512) split over [state|prev] + sector
    # Linear(13,32) split over [state|prev|chi]; both zero-padded to 206 rows
    # and concatenated along N -> [206, 544].
    fw1_s = jnp.pad(p["fw1"][0:FIRM_F], ((0, SECTOR_F), (0, 0)))           # [206,512]
    fw1_p = jnp.pad(p["fw1"][FIRM_F:2 * FIRM_F], ((0, SECTOR_F), (0, 0)))  # [206,512]
    sw1_s = jnp.pad(p["sw1"][0:SECTOR_F], ((FIRM_F, 0), (0, 0)))           # [206,32]
    sw1_p = jnp.pad(p["sw1"][SECTOR_F:2 * SECTOR_F], ((FIRM_F, 0), (0, 0)))
    w1_s = jnp.concatenate([fw1_s, sw1_s], axis=1)                         # [206,544]
    w1_p = jnp.concatenate([fw1_p, sw1_p], axis=1)                         # [206,544]
    w1_c = jnp.concatenate(
        [jnp.zeros((1, 512), jnp.float32), p["sw1"][2 * SECTOR_F:2 * SECTOR_F + 1]],
        axis=1)                                                            # [1,544] f32

    # Shared layer 1: Linear(152,256) split into firm(128) and fused
    # sector(16)||chi(8) = 24 rows.
    shwf = p["shw1"][0:128]                                                # [128,256]
    shwsc = p["shw1"][128:152]                                             # [24,256]

    # Merged bias array with 128-aligned slots.
    bias = jnp.zeros((1, _BIAS_TOTAL), jnp.float32)
    vals = {
        "b1": jnp.concatenate([p["fb1"], p["sb1"]], axis=1),
        "fb2": p["fb2"], "fb3": p["fb3"],
        "sb2": p["sb2"], "sb3": p["sb3"],
        "cb1": p["cb1"], "cb2": p["cb2"],
        "shb1": p["shb1"], "shb2": p["shb2"],
        "mb1": p["mb1"], "mb_out": p["mb2"],
    }
    for name, (off, n) in _BIAS_SLOT.items():
        bias = bias.at[:, off:off + n].set(vals[name])

    return (
        w(w1_s), w(w1_p), w1_c,
        w(p["fw2"]), w(p["fw3"]),
        w(p["sw2"]), w(p["sw3"]),
        p["cw1"], p["cw2"],                 # chi layers stay f32 (VPU path)
        w(shwf), w(shwsc), w(p["shw2"]),
        w(p["mw1"]), w(p["mw2"]),
        bias,
    )


# ----------------------------------------------------------------------------
# Wrapper
# ----------------------------------------------------------------------------
def _choose_tile(b):
    if b <= 256:
        # Single tile; multiple of 16 for bf16 sublane packing.
        return _round_up(max(b, 1), 16)
    # >= 2 grid steps so the "parallel" batch axis shards across v7x's two
    # TensorCores; cap at 512 to stay well inside v5e's default VMEM budget.
    return min(512, _round_up(-(-b // 2), 128))


@functools.partial(jax.jit, static_argnames=("tile_m",))
def sac_actor_forward(state, prev_state, chi, kernel_params, tile_m=None):
    """state/prev_state: [B, 206], chi: [B, 1] -> (mu [B, 1], logstd [B, 1])."""
    b = state.shape[0]
    if tile_m is None:
        tile_m = _choose_tile(b)
    padded_b = _round_up(b, tile_m)

    # Stream state/prev as bf16 (weights are VMEM-resident, so this is the
    # only per-tile HBM traffic that matters); chi stays f32.
    state = state.astype(jnp.bfloat16)
    prev_state = prev_state.astype(jnp.bfloat16)
    chi = chi.astype(jnp.float32)
    if padded_b != b:
        rows = ((0, padded_b - b), (0, 0))
        state = jnp.pad(state, rows)
        prev_state = jnp.pad(prev_state, rows)
        chi = jnp.pad(chi, rows)

    grid = (padded_b // tile_m,)

    act_specs = [
        pl.BlockSpec((tile_m, STATE_DIM), lambda i: (i, 0)),
        pl.BlockSpec((tile_m, STATE_DIM), lambda i: (i, 0)),
        pl.BlockSpec((tile_m, 1), lambda i: (i, 0)),
    ]
    # Weights/biases: full block, constant block index -> DMA'd once, then
    # VMEM-resident across all batch tiles.
    weight_specs = [pl.BlockSpec(x.shape, lambda i: (0, 0)) for x in kernel_params]

    out = pl.pallas_call(
        sac_actor_kernel,
        out_shape=jax.ShapeDtypeStruct((padded_b, 2), jnp.float32),
        grid=grid,
        in_specs=act_specs + weight_specs,
        out_specs=pl.BlockSpec((tile_m, 2), lambda i: (i, 0)),
        compiler_params=pltpu.CompilerParams(
            dimension_semantics=("parallel",)),
    )(state, prev_state, chi, *kernel_params)

    mu = out[:b, 0:1]
    logstd = out[:b, 1:2]   # already clipped to [-20, 2] in-kernel
    return mu, logstd


# ----------------------------------------------------------------------------
# Pure-JAX f32 reference (PyTorch forward semantics)
# ----------------------------------------------------------------------------
def sac_actor_reference(p, state, prev_state, chi):
    relu = jax.nn.relu
    firm_in = jnp.concatenate([state[:, :FIRM_F], prev_state[:, :FIRM_F]], axis=1)
    sector_in = jnp.concatenate(
        [state[:, FIRM_F:], prev_state[:, FIRM_F:], chi], axis=1)
    h = relu(firm_in @ p["fw1"] + p["fb1"])
    h = relu(h @ p["fw2"] + p["fb2"])
    firm_out = relu(h @ p["fw3"] + p["fb3"])
    h = relu(sector_in @ p["sw1"] + p["sb1"])
    h = relu(h @ p["sw2"] + p["sb2"])
    sector_out = relu(h @ p["sw3"] + p["sb3"])
    h = relu(chi @ p["cw1"] + p["cb1"])
    chi_emb = relu(h @ p["cw2"] + p["cb2"])
    comb = jnp.concatenate([firm_out, sector_out, chi_emb], axis=1)
    h = relu(comb @ p["shw1"] + p["shb1"])
    shared = relu(h @ p["shw2"] + p["shb2"])
    h = relu(shared @ p["mw1"] + p["mb1"])
    head = h @ p["mw2"] + p["mb2"]
    return head[:, 0:1], jnp.clip(head[:, 1:2], -20.0, 2.0)


# TODO(synk): predict_actions / get_action (Normal rsample, tanh squash, log-prob)
# are host-side sampling utilities, not part of the module's forward pass.

# ----------------------------------------------------------------------------
# Demo
# ----------------------------------------------------------------------------
if __name__ == "__main__":
    key = jax.random.PRNGKey(0)
    k_params, k_state, k_prev, k_chi = jax.random.split(key, 4)

    params = init_sac_actor_params(k_params)
    kernel_params = pack_params_for_kernel(params)

    B = 2
    state = jax.random.normal(k_state, (B, STATE_DIM), jnp.float32)
    prev_state = jax.random.normal(k_prev, (B, STATE_DIM), jnp.float32)
    chi = jax.random.normal(k_chi, (B, 1), jnp.float32)

    mu, logstd = sac_actor_forward(state, prev_state, chi, kernel_params)
    jax.block_until_ready((mu, logstd))

    assert mu.shape == (B, 1) and logstd.shape == (B, 1)
    assert bool(jnp.all(jnp.isfinite(mu))) and bool(jnp.all(jnp.isfinite(logstd)))
    assert bool(jnp.all(logstd >= -20.0)) and bool(jnp.all(logstd <= 2.0))

    # Loose tolerance: weights/inputs are bf16 in the kernel.
    mu_ref, logstd_ref = sac_actor_reference(params, state, prev_state, chi)
    err = float(jnp.max(jnp.abs(jnp.concatenate([mu - mu_ref, logstd - logstd_ref], axis=1))))
    assert err < 0.05, f"max abs error vs f32 reference too large: {err}"

    print("KERNEL_OK")
</pallas_src>

<mosaic_0001>
module attributes {stable_mosaic.version = 11 : i64} {
  func.func @sac_actor_kernel(%arg0: i32, %arg1: memref<16x206xbf16, #tpu.memory_space<vmem>>, %arg2: memref<16x206xbf16, #tpu.memory_space<vmem>>, %arg3: memref<16x1xf32, #tpu.memory_space<vmem>>, %arg4: memref<206x544xbf16, #tpu.memory_space<vmem>>, %arg5: memref<206x544xbf16, #tpu.memory_space<vmem>>, %arg6: memref<1x544xf32, #tpu.memory_space<vmem>>, %arg7: memref<512x256xbf16, #tpu.memory_space<vmem>>, %arg8: memref<256x128xbf16, #tpu.memory_space<vmem>>, %arg9: memref<32x32xbf16, #tpu.memory_space<vmem>>, %arg10: memref<32x16xbf16, #tpu.memory_space<vmem>>, %arg11: memref<1x8xf32, #tpu.memory_space<vmem>>, %arg12: memref<8x8xf32, #tpu.memory_space<vmem>>, %arg13: memref<128x256xbf16, #tpu.memory_space<vmem>>, %arg14: memref<24x256xbf16, #tpu.memory_space<vmem>>, %arg15: memref<256x256xbf16, #tpu.memory_space<vmem>>, %arg16: memref<256x256xbf16, #tpu.memory_space<vmem>>, %arg17: memref<256x2xbf16, #tpu.memory_space<vmem>>, %arg18: memref<1x2432xf32, #tpu.memory_space<vmem>>, %arg19: memref<16x2xf32, #tpu.memory_space<vmem>>) attributes {dimension_semantics = [#tpu.dimension_semantics<parallel>], iteration_bounds = array<i64: 1>, scalar_prefetch = 0 : i64, scratch_operands = 0 : i64, tpu.core_type = #tpu.core_type<tc>, window_params = [{transform_indices = @transform_0, window_bounds = array<i64: 16, 206>}, {transform_indices = @transform_1, window_bounds = array<i64: 16, 206>}, {transform_indices = @transform_2, window_bounds = array<i64: 16, 1>}, {pipeline_mode = #tpu.pipeline_mode<synchronous>, transform_indices = @transform_3, window_bounds = array<i64: 206, 544>}, {pipeline_mode = #tpu.pipeline_mode<synchronous>, transform_indices = @transform_4, window_bounds = array<i64: 206, 544>}, {pipeline_mode = #tpu.pipeline_mode<synchronous>, transform_indices = @transform_5, window_bounds = array<i64: 1, 544>}, {pipeline_mode = #tpu.pipeline_mode<synchronous>, transform_indices = @transform_6, window_bounds = array<i64: 512, 256>}, {pipeline_mode = #tpu.pipeline_mode<synchronous>, transform_indices = @transform_7, window_bounds = array<i64: 256, 128>}, {pipeline_mode = #tpu.pipeline_mode<synchronous>, transform_indices = @transform_8, window_bounds = array<i64: 32, 32>}, {pipeline_mode = #tpu.pipeline_mode<synchronous>, transform_indices = @transform_9, window_bounds = array<i64: 32, 16>}, {pipeline_mode = #tpu.pipeline_mode<synchronous>, transform_indices = @transform_10, window_bounds = array<i64: 1, 8>}, {pipeline_mode = #tpu.pipeline_mode<synchronous>, transform_indices = @transform_11, window_bounds = array<i64: 8, 8>}, {pipeline_mode = #tpu.pipeline_mode<synchronous>, transform_indices = @transform_12, window_bounds = array<i64: 128, 256>}, {pipeline_mode = #tpu.pipeline_mode<synchronous>, transform_indices = @transform_13, window_bounds = array<i64: 24, 256>}, {pipeline_mode = #tpu.pipeline_mode<synchronous>, transform_indices = @transform_14, window_bounds = array<i64: 256, 256>}, {pipeline_mode = #tpu.pipeline_mode<synchronous>, transform_indices = @transform_15, window_bounds = array<i64: 256, 256>}, {pipeline_mode = #tpu.pipeline_mode<synchronous>, transform_indices = @transform_16, window_bounds = array<i64: 256, 2>}, {pipeline_mode = #tpu.pipeline_mode<synchronous>, transform_indices = @transform_17, window_bounds = array<i64: 1, 2432>}, {transform_indices = @transform_18, window_bounds = array<i64: 16, 2>}]} {
    %c0 = arith.constant 0 : index
    %c0_0 = arith.constant 0 : index
    %0 = vector.load %arg1[%c0, %c0_0] : memref<16x206xbf16, #tpu.memory_space<vmem>>, vector<16x206xbf16>
    %c0_1 = arith.constant 0 : index
    %c0_2 = arith.constant 0 : index
    %1 = vector.load %arg2[%c0_1, %c0_2] : memref<16x206xbf16, #tpu.memory_space<vmem>>, vector<16x206xbf16>
    %c0_3 = arith.constant 0 : index
    %c0_4 = arith.constant 0 : index
    %2 = vector.load %arg3[%c0_3, %c0_4] : memref<16x1xf32, #tpu.memory_space<vmem>>, vector<16x1xf32>
    %c0_5 = arith.constant 0 : index
    %c0_6 = arith.constant 0 : index
    %3 = vector.load %arg4[%c0_5, %c0_6] : memref<206x544xbf16, #tpu.memory_space<vmem>>, vector<206x544xbf16>
    %cst = arith.constant dense<0.000000e+00> : vector<16x544xf32>
    %4 = tpu.matmul %0, %3, %cst {dimension_numbers = #tpu.dot_dimension_numbers<[1], [0], [0], [1], [0, 0, 1, 1], [], []>} : vector<16x206xbf16>, vector<206x544xbf16>, vector<16x544xf32> -> vector<16x544xf32>
    %c0_7 = arith.constant 0 : index
    %c0_8 = arith.constant 0 : index
    %5 = vector.load %arg5[%c0_7, %c0_8] : memref<206x544xbf16, #tpu.memory_space<vmem>>, vector<206x544xbf16>
    %cst_9 = arith.constant dense<0.000000e+00> : vector<16x544xf32>
    %6 = tpu.matmul %1, %5, %cst_9 {dimension_numbers = #tpu.dot_dimension_numbers<[1], [0], [0], [1], [0, 0, 1, 1], [], []>} : vector<16x206xbf16>, vector<206x544xbf16>, vector<16x544xf32> -> vector<16x544xf32>
    %7 = arith.addf %4, %6 : vector<16x544xf32>
    %c0_10 = arith.constant 0 : index
    %c0_11 = arith.constant 0 : index
    %8 = vector.load %arg6[%c0_10, %c0_11] : memref<1x544xf32, #tpu.memory_space<vmem>>, vector<1x544xf32>
    %9 = vector.broadcast %2 : vector<16x1xf32> to vector<16x544xf32>
    %10 = vector.broadcast %8 : vector<1x544xf32> to vector<16x544xf32>
    %11 = arith.mulf %9, %10 : vector<16x544xf32>
    %12 = arith.addf %7, %11 : vector<16x544xf32>
    %c0_12 = arith.constant 0 : index
    %c0_13 = arith.constant 0 : index
    %13 = vector.load %arg18[%c0_12, %c0_13] : memref<1x2432xf32, #tpu.memory_space<vmem>>, vector<1x544xf32>
    %14 = vector.broadcast %13 : vector<1x544xf32> to vector<16x544xf32>
    %15 = arith.addf %12, %14 : vector<16x544xf32>
    %cst_14 = arith.constant 0.000000e+00 : f32
    %16 = vector.broadcast %cst_14 : f32 to vector<16x544xf32>
    %17 = arith.maximumf %15, %16 : vector<16x544xf32>
    %18 = vector.extract_strided_slice %17 {offsets = [0, 0], sizes = [16, 512], strides = [1, 1]} : vector<16x544xf32> to vector<16x512xf32>
    %19 = vector.extract_strided_slice %17 {offsets = [0, 512], sizes = [16, 32], strides = [1, 1]} : vector<16x544xf32> to vector<16x32xf32>
    %20 = arith.truncf %18 : vector<16x512xf32> to vector<16x512xbf16>
    %c0_15 = arith.constant 0 : index
    %c0_16 = arith.constant 0 : index
    %21 = vector.load %arg7[%c0_15, %c0_16] : memref<512x256xbf16, #tpu.memory_space<vmem>>, vector<512x256xbf16>
    %cst_17 = arith.constant dense<0.000000e+00> : vector<16x256xf32>
    %22 = tpu.matmul %20, %21, %cst_17 {dimension_numbers = #tpu.dot_dimension_numbers<[1], [0], [0], [1], [0, 0, 1, 1], [], []>} : vector<16x512xbf16>, vector<512x256xbf16>, vector<16x256xf32> -> vector<16x256xf32>
    %c0_18 = arith.constant 0 : index
    %c640 = arith.constant 640 : index
    %23 = vector.load %arg18[%c0_18, %c640] : memref<1x2432xf32, #tpu.memory_space<vmem>>, vector<1x256xf32>
    %24 = vector.broadcast %23 : vector<1x256xf32> to vector<16x256xf32>
    %25 = arith.addf %22, %24 : vector<16x256xf32>
    %cst_19 = arith.constant 0.000000e+00 : f32
    %26 = vector.broadcast %cst_19 : f32 to vector<16x256xf32>
    %27 = arith.maximumf %25, %26 : vector<16x256xf32>
    %28 = arith.truncf %27 : vector<16x256xf32> to vector<16x256xbf16>
    %c0_20 = arith.constant 0 : index
    %c0_21 = arith.constant 0 : index
    %29 = vector.load %arg8[%c0_20, %c0_21] : memref<256x128xbf16, #tpu.memory_space<vmem>>, vector<256x128xbf16>
    %cst_22 = arith.constant dense<0.000000e+00> : vector<16x128xf32>
    %30 = tpu.matmul %28, %29, %cst_22 {dimension_numbers = #tpu.dot_dimension_numbers<[1], [0], [0], [1], [0, 0, 1, 1], [], []>} : vector<16x256xbf16>, vector<256x128xbf16>, vector<16x128xf32> -> vector<16x128xf32>
    %c0_23 = arith.constant 0 : index
    %c896 = arith.constant 896 : index
    %31 = vector.load %arg18[%c0_23, %c896] : memref<1x2432xf32, #tpu.memory_space<vmem>>, vector<1x128xf32>
    %32 = vector.broadcast %31 : vector<1x128xf32> to vector<16x128xf32>
    %33 = arith.addf %30, %32 : vector<16x128xf32>
    %cst_24 = arith.constant 0.000000e+00 : f32
    %34 = vector.broadcast %cst_24 : f32 to vector<16x128xf32>
    %35 = arith.maximumf %33, %34 : vector<16x128xf32>
    %36 = arith.truncf %19 : vector<16x32xf32> to vector<16x32xbf16>
    %c0_25 = arith.constant 0 : index
    %c0_26 = arith.constant 0 : index
    %37 = vector.load %arg9[%c0_25, %c0_26] : memref<32x32xbf16, #tpu.memory_space<vmem>>, vector<32x32xbf16>
    %cst_27 = arith.constant dense<0.000000e+00> : vector<16x32xf32>
    %38 = tpu.matmul %36, %37, %cst_27 {dimension_numbers = #tpu.dot_dimension_numbers<[1], [0], [0], [1], [0, 0, 1, 1], [], []>} : vector<16x32xbf16>, vector<32x32xbf16>, vector<16x32xf32> -> vector<16x32xf32>
    %c0_28 = arith.constant 0 : index
    %c1024 = arith.constant 1024 : index
    %39 = vector.load %arg18[%c0_28, %c1024] : memref<1x2432xf32, #tpu.memory_space<vmem>>, vector<1x32xf32>
    %40 = vector.broadcast %39 : vector<1x32xf32> to vector<16x32xf32>
    %41 = arith.addf %38, %40 : vector<16x32xf32>
    %cst_29 = arith.constant 0.000000e+00 : f32
    %42 = vector.broadcast %cst_29 : f32 to vector<16x32xf32>
    %43 = arith.maximumf %41, %42 : vector<16x32xf32>
    %44 = arith.truncf %43 : vector<16x32xf32> to vector<16x32xbf16>
    %c0_30 = arith.constant 0 : index
    %c0_31 = arith.constant 0 : index
    %45 = vector.load %arg10[%c0_30, %c0_31] : memref<32x16xbf16, #tpu.memory_space<vmem>>, vector<32x16xbf16>
    %cst_32 = arith.constant dense<0.000000e+00> : vector<16x16xf32>
    %46 = tpu.matmul %44, %45, %cst_32 {dimension_numbers = #tpu.dot_dimension_numbers<[1], [0], [0], [1], [0, 0, 1, 1], [], []>} : vector<16x32xbf16>, vector<32x16xbf16>, vector<16x16xf32> -> vector<16x16xf32>
    %c0_33 = arith.constant 0 : index
    %c1152 = arith.constant 1152 : index
    %47 = vector.load %arg18[%c0_33, %c1152] : memref<1x2432xf32, #tpu.memory_space<vmem>>, vector<1x16xf32>
    %48 = vector.broadcast %47 : vector<1x16xf32> to vector<16x16xf32>
    %49 = arith.addf %46, %48 : vector<16x16xf32>
    %cst_34 = arith.constant 0.000000e+00 : f32
    %50 = vector.broadcast %cst_34 : f32 to vector<16x16xf32>
    %51 = arith.maximumf %49, %50 : vector<16x16xf32>
    %c0_35 = arith.constant 0 : index
    %c0_36 = arith.constant 0 : index
    %52 = vector.load %arg11[%c0_35, %c0_36] : memref<1x8xf32, #tpu.memory_space<vmem>>, vector<1x8xf32>
    %53 = vector.broadcast %2 : vector<16x1xf32> to vector<16x8xf32>
    %54 = vector.broadcast %52 : vector<1x8xf32> to vector<16x8xf32>
    %55 = arith.mulf %53, %54 : vector<16x8xf32>
    %c0_37 = arith.constant 0 : index
    %c1280 = arith.constant 1280 : index
    %56 = vector.load %arg18[%c0_37, %c1280] : memref<1x2432xf32, #tpu.memory_space<vmem>>, vector<1x8xf32>
    %57 = vector.broadcast %56 : vector<1x8xf32> to vector<16x8xf32>
    %58 = arith.addf %55, %57 : vector<16x8xf32>
    %cst_38 = arith.constant 0.000000e+00 : f32
    %59 = vector.broadcast %cst_38 : f32 to vector<16x8xf32>
    %60 = arith.maximumf %58, %59 : vector<16x8xf32>
    %c0_39 = arith.constant 0 : index
    %c0_40 = arith.constant 0 : index
    %61 = vector.load %arg12[%c0_39, %c0_40] : memref<8x8xf32, #tpu.memory_space<vmem>>, vector<8x8xf32>
    %62 = vector.extract_strided_slice %60 {offsets = [0, 0], sizes = [16, 1], strides = [1, 1]} : vector<16x8xf32> to vector<16x1xf32>
    %63 = vector.extract_strided_slice %61 {offsets = [0, 0], sizes = [1, 8], strides = [1, 1]} : vector<8x8xf32> to vector<1x8xf32>
    %64 = vector.broadcast %62 : vector<16x1xf32> to vector<16x8xf32>
    %65 = vector.broadcast %63 : vector<1x8xf32> to vector<16x8xf32>
    %66 = arith.mulf %64, %65 : vector<16x8xf32>
    %67 = vector.extract_strided_slice %60 {offsets = [0, 1], sizes = [16, 1], strides = [1, 1]} : vector<16x8xf32> to vector<16x1xf32>
    %68 = vector.extract_strided_slice %61 {offsets = [1, 0], sizes = [1, 8], strides = [1, 1]} : vector<8x8xf32> to vector<1x8xf32>
    %69 = vector.broadcast %67 : vector<16x1xf32> to vector<16x8xf32>
    %70 = vector.broadcast %68 : vector<1x8xf32> to vector<16x8xf32>
    %71 = arith.mulf %69, %70 : vector<16x8xf32>
    %72 = arith.addf %66, %71 : vector<16x8xf32>
    %73 = vector.extract_strided_slice %60 {offsets = [0, 2], sizes = [16, 1], strides = [1, 1]} : vector<16x8xf32> to vector<16x1xf32>
    %74 = vector.extract_strided_slice %61 {offsets = [2, 0], sizes = [1, 8], strides = [1, 1]} : vector<8x8xf32> to vector<1x8xf32>
    %75 = vector.broadcast %73 : vector<16x1xf32> to vector<16x8xf32>
    %76 = vector.broadcast %74 : vector<1x8xf32> to vector<16x8xf32>
    %77 = arith.mulf %75, %76 : vector<16x8xf32>
    %78 = arith.addf %72, %77 : vector<16x8xf32>
    %79 = vector.extract_strided_slice %60 {offsets = [0, 3], sizes = [16, 1], strides = [1, 1]} : vector<16x8xf32> to vector<16x1xf32>
    %80 = vector.extract_strided_slice %61 {offsets = [3, 0], sizes = [1, 8], strides = [1, 1]} : vector<8x8xf32> to vector<1x8xf32>
    %81 = vector.broadcast %79 : vector<16x1xf32> to vector<16x8xf32>
    %82 = vector.broadcast %80 : vector<1x8xf32> to vector<16x8xf32>
    %83 = arith.mulf %81, %82 : vector<16x8xf32>
    %84 = arith.addf %78, %83 : vector<16x8xf32>
    %85 = vector.extract_strided_slice %60 {offsets = [0, 4], sizes = [16, 1], strides = [1, 1]} : vector<16x8xf32> to vector<16x1xf32>
    %86 = vector.extract_strided_slice %61 {offsets = [4, 0], sizes = [1, 8], strides = [1, 1]} : vector<8x8xf32> to vector<1x8xf32>
    %87 = vector.broadcast %85 : vector<16x1xf32> to vector<16x8xf32>
    %88 = vector.broadcast %86 : vector<1x8xf32> to vector<16x8xf32>
    %89 = arith.mulf %87, %88 : vector<16x8xf32>
    %90 = arith.addf %84, %89 : vector<16x8xf32>
    %91 = vector.extract_strided_slice %60 {offsets = [0, 5], sizes = [16, 1], strides = [1, 1]} : vector<16x8xf32> to vector<16x1xf32>
    %92 = vector.extract_strided_slice %61 {offsets = [5, 0], sizes = [1, 8], strides = [1, 1]} : vector<8x8xf32> to vector<1x8xf32>
    %93 = vector.broadcast %91 : vector<16x1xf32> to vector<16x8xf32>
    %94 = vector.broadcast %92 : vector<1x8xf32> to vector<16x8xf32>
    %95 = arith.mulf %93, %94 : vector<16x8xf32>
    %96 = arith.addf %90, %95 : vector<16x8xf32>
    %97 = vector.extract_strided_slice %60 {offsets = [0, 6], sizes = [16, 1], strides = [1, 1]} : vector<16x8xf32> to vector<16x1xf32>
    %98 = vector.extract_strided_slice %61 {offsets = [6, 0], sizes = [1, 8], strides = [1, 1]} : vector<8x8xf32> to vector<1x8xf32>
    %99 = vector.broadcast %97 : vector<16x1xf32> to vector<16x8xf32>
    %100 = vector.broadcast %98 : vector<1x8xf32> to vector<16x8xf32>
    %101 = arith.mulf %99, %100 : vector<16x8xf32>
    %102 = arith.addf %96, %101 : vector<16x8xf32>
    %103 = vector.extract_strided_slice %60 {offsets = [0, 7], sizes = [16, 1], strides = [1, 1]} : vector<16x8xf32> to vector<16x1xf32>
    %104 = vector.extract_strided_slice %61 {offsets = [7, 0], sizes = [1, 8], strides = [1, 1]} : vector<8x8xf32> to vector<1x8xf32>
    %105 = vector.broadcast %103 : vector<16x1xf32> to vector<16x8xf32>
    %106 = vector.broadcast %104 : vector<1x8xf32> to vector<16x8xf32>
    %107 = arith.mulf %105, %106 : vector<16x8xf32>
    %108 = arith.addf %102, %107 : vector<16x8xf32>
    %c0_41 = arith.constant 0 : index
    %c1408 = arith.constant 1408 : index
    %109 = vector.load %arg18[%c0_41, %c1408] : memref<1x2432xf32, #tpu.memory_space<vmem>>, vector<1x8xf32>
    %110 = vector.broadcast %109 : vector<1x8xf32> to vector<16x8xf32>
    %111 = arith.addf %108, %110 : vector<16x8xf32>
    %cst_42 = arith.constant 0.000000e+00 : f32
    %112 = vector.broadcast %cst_42 : f32 to vector<16x8xf32>
    %113 = arith.maximumf %111, %112 : vector<16x8xf32>
    %114 = tpu.concatenate %51, %113 in 1 : vector<16x16xf32>, vector<16x8xf32> -> vector<16x24xf32>
    %115 = arith.truncf %35 : vector<16x128xf32> to vector<16x128xbf16>
    %c0_43 = arith.constant 0 : index
    %c0_44 = arith.constant 0 : index
    %116 = vector.load %arg13[%c0_43, %c0_44] : memref<128x256xbf16, #tpu.memory_space<vmem>>, vector<128x256xbf16>
    %cst_45 = arith.constant dense<0.000000e+00> : vector<16x256xf32>
    %117 = tpu.matmul %115, %116, %cst_45 {dimension_numbers = #tpu.dot_dimension_numbers<[1], [0], [0], [1], [0, 0, 1, 1], [], []>} : vector<16x128xbf16>, vector<128x256xbf16>, vector<16x256xf32> -> vector<16x256xf32>
    %118 = arith.truncf %114 : vector<16x24xf32> to vector<16x24xbf16>
    %c0_46 = arith.constant 0 : index
    %c0_47 = arith.constant 0 : index
    %119 = vector.load %arg14[%c0_46, %c0_47] : memref<24x256xbf16, #tpu.memory_space<vmem>>, vector<24x256xbf16>
    %cst_48 = arith.constant dense<0.000000e+00> : vector<16x256xf32>
    %120 = tpu.matmul %118, %119, %cst_48 {dimension_numbers = #tpu.dot_dimension_numbers<[1], [0], [0], [1], [0, 0, 1, 1], [], []>} : vector<16x24xbf16>, vector<24x256xbf16>, vector<16x256xf32> -> vector<16x256xf32>
    %121 = arith.addf %117, %120 : vector<16x256xf32>
    %c0_49 = arith.constant 0 : index
    %c1536 = arith.constant 1536 : index
    %122 = vector.load %arg18[%c0_49, %c1536] : memref<1x2432xf32, #tpu.memory_space<vmem>>, vector<1x256xf32>
    %123 = vector.broadcast %122 : vector<1x256xf32> to vector<16x256xf32>
    %124 = arith.addf %121, %123 : vector<16x256xf32>
    %cst_50 = arith.constant 0.000000e+00 : f32
    %125 = vector.broadcast %cst_50 : f32 to vector<16x256xf32>
    %126 = arith.maximumf %124, %125 : vector<16x256xf32>
    %127 = arith.truncf %126 : vector<16x256xf32> to vector<16x256xbf16>
    %c0_51 = arith.constant 0 : index
    %c0_52 = arith.constant 0 : index
    %128 = vector.load %arg15[%c0_51, %c0_52] : memref<256x256xbf16, #tpu.memory_space<vmem>>, vector<256x256xbf16>
    %cst_53 = arith.constant dense<0.000000e+00> : vector<16x256xf32>
    %129 = tpu.matmul %127, %128, %cst_53 {dimension_numbers = #tpu.dot_dimension_numbers<[1], [0], [0], [1], [0, 0, 1, 1], [], []>} : vector<16x256xbf16>, vector<256x256xbf16>, vector<16x256xf32> -> vector<16x256xf32>
    %c0_54 = arith.constant 0 : index
    %c1792 = arith.constant 1792 : index
    %130 = vector.load %arg18[%c0_54, %c1792] : memref<1x2432xf32, #tpu.memory_space<vmem>>, vector<1x256xf32>
    %131 = vector.broadcast %130 : vector<1x256xf32> to vector<16x256xf32>
    %132 = arith.addf %129, %131 : vector<16x256xf32>
    %cst_55 = arith.constant 0.000000e+00 : f32
    %133 = vector.broadcast %cst_55 : f32 to vector<16x256xf32>
    %134 = arith.maximumf %132, %133 : vector<16x256xf32>
    %135 = arith.truncf %134 : vector<16x256xf32> to vector<16x256xbf16>
    %c0_56 = arith.constant 0 : index
    %c0_57 = arith.constant 0 : index
    %136 = vector.load %arg16[%c0_56, %c0_57] : memref<256x256xbf16, #tpu.memory_space<vmem>>, vector<256x256xbf16>
    %cst_58 = arith.constant dense<0.000000e+00> : vector<16x256xf32>
    %137 = tpu.matmul %135, %136, %cst_58 {dimension_numbers = #tpu.dot_dimension_numbers<[1], [0], [0], [1], [0, 0, 1, 1], [], []>} : vector<16x256xbf16>, vector<256x256xbf16>, vector<16x256xf32> -> vector<16x256xf32>
    %c0_59 = arith.constant 0 : index
    %c2048 = arith.constant 2048 : index
    %138 = vector.load %arg18[%c0_59, %c2048] : memref<1x2432xf32, #tpu.memory_space<vmem>>, vector<1x256xf32>
    %139 = vector.broadcast %138 : vector<1x256xf32> to vector<16x256xf32>
    %140 = arith.addf %137, %139 : vector<16x256xf32>
    %cst_60 = arith.constant 0.000000e+00 : f32
    %141 = vector.broadcast %cst_60 : f32 to vector<16x256xf32>
    %142 = arith.maximumf %140, %141 : vector<16x256xf32>
    %143 = arith.truncf %142 : vector<16x256xf32> to vector<16x256xbf16>
    %c0_61 = arith.constant 0 : index
    %c0_62 = arith.constant 0 : index
    %144 = vector.load %arg17[%c0_61, %c0_62] : memref<256x2xbf16, #tpu.memory_space<vmem>>, vector<256x2xbf16>
    %cst_63 = arith.constant dense<0.000000e+00> : vector<16x2xf32>
    %145 = tpu.matmul %143, %144, %cst_63 {dimension_numbers = #tpu.dot_dimension_numbers<[1], [0], [0], [1], [0, 0, 1, 1], [], []>} : vector<16x256xbf16>, vector<256x2xbf16>, vector<16x2xf32> -> vector<16x2xf32>
    %c0_64 = arith.constant 0 : index
    %c2304 = arith.constant 2304 : index
    %146 = vector.load %arg18[%c0_64, %c2304] : memref<1x2432xf32, #tpu.memory_space<vmem>>, vector<1x2xf32>
    %147 = vector.broadcast %146 : vector<1x2xf32> to vector<16x2xf32>
    %148 = arith.addf %145, %147 : vector<16x2xf32>
    %149 = tpu.iota {dimensions = array<i32: 1>} : vector<16x2xi32>
    %c1_i32 = arith.constant 1 : i32
    %150 = vector.broadcast %c1_i32 : i32 to vector<16x2xi32>
    %151 = arith.cmpi eq, %149, %150 : vector<16x2xi32>
    %cst_65 = arith.constant -2.000000e+01 : f32
    %cst_66 = arith.constant 2.000000e+00 : f32
    %152 = vector.broadcast %cst_65 : f32 to vector<16x2xf32>
    %153 = arith.maximumf %152, %148 : vector<16x2xf32>
    %154 = vector.broadcast %cst_66 : f32 to vector<16x2xf32>
    %155 = arith.minimumf %154, %153 : vector<16x2xf32>
    %156 = arith.select %151, %155, %148 : vector<16x2xi1>, vector<16x2xf32>
    %c0_67 = arith.constant 0 : index
    %c0_68 = arith.constant 0 : index
    %157 = vector.load %arg19[%c0_67, %c0_68] : memref<16x2xf32, #tpu.memory_space<vmem>>, vector<16x2xf32>
    tpu.vector_store %arg19[%c0_67, %c0_68], %156 {strides = array<i32>} : memref<16x2xf32, #tpu.memory_space<vmem>>, vector<16x2xf32>,
    return
  }
  func.func @transform_0(%arg0: i32) -> (i32, i32) {
    %c0_i32 = arith.constant 0 : i32
    %c0_i32_0 = arith.constant 0 : i32
    return %arg0, %c0_i32 : i32, i32
  }
  func.func @transform_1(%arg0: i32) -> (i32, i32) {
    %c0_i32 = arith.constant 0 : i32
    %c0_i32_0 = arith.constant 0 : i32
    return %arg0, %c0_i32 : i32, i32
  }
  func.func @transform_2(%arg0: i32) -> (i32, i32) {
    %c0_i32 = arith.constant 0 : i32
    %c0_i32_0 = arith.constant 0 : i32
    return %arg0, %c0_i32 : i32, i32
  }
  func.func @transform_3(%arg0: i32) -> (i32, i32) {
    %c0_i32 = arith.constant 0 : i32
    %c0_i32_0 = arith.constant 0 : i32
    %c0_i32_1 = arith.constant 0 : i32
    return %c0_i32, %c0_i32_0 : i32, i32
  }
  func.func @transform_4(%arg0: i32) -> (i32, i32) {
    %c0_i32 = arith.constant 0 : i32
    %c0_i32_0 = arith.constant 0 : i32
    %c0_i32_1 = arith.constant 0 : i32
    return %c0_i32, %c0_i32_0 : i32, i32
  }
  func.func @transform_5(%arg0: i32) -> (i32, i32) {
    %c0_i32 = arith.constant 0 : i32
    %c0_i32_0 = arith.constant 0 : i32
    %c0_i32_1 = arith.constant 0 : i32
    return %c0_i32, %c0_i32_0 : i32, i32
  }
  func.func @transform_6(%arg0: i32) -> (i32, i32) {
    %c0_i32 = arith.constant 0 : i32
    %c0_i32_0 = arith.constant 0 : i32
    %c0_i32_1 = arith.constant 0 : i32
    return %c0_i32, %c0_i32_0 : i32, i32
  }
  func.func @transform_7(%arg0: i32) -> (i32, i32) {
    %c0_i32 = arith.constant 0 : i32
    %c0_i32_0 = arith.constant 0 : i32
    %c0_i32_1 = arith.constant 0 : i32
    return %c0_i32, %c0_i32_0 : i32, i32
  }
  func.func @transform_8(%arg0: i32) -> (i32, i32) {
    %c0_i32 = arith.constant 0 : i32
    %c0_i32_0 = arith.constant 0 : i32
    %c0_i32_1 = arith.constant 0 : i32
    return %c0_i32, %c0_i32_0 : i32, i32
  }
  func.func @transform_9(%arg0: i32) -> (i32, i32) {
    %c0_i32 = arith.constant 0 : i32
    %c0_i32_0 = arith.constant 0 : i32
    %c0_i32_1 = arith.constant 0 : i32
    return %c0_i32, %c0_i32_0 : i32, i32
  }
  func.func @transform_10(%arg0: i32) -> (i32, i32) {
    %c0_i32 = arith.constant 0 : i32
    %c0_i32_0 = arith.constant 0 : i32
    %c0_i32_1 = arith.constant 0 : i32
    return %c0_i32, %c0_i32_0 : i32, i32
  }
  func.func @transform_11(%arg0: i32) -> (i32, i32) {
    %c0_i32 = arith.constant 0 : i32
    %c0_i32_0 = arith.constant 0 : i32
    %c0_i32_1 = arith.constant 0 : i32
    return %c0_i32, %c0_i32_0 : i32, i32
  }
  func.func @transform_12(%arg0: i32) -> (i32, i32) {
    %c0_i32 = arith.constant 0 : i32
    %c0_i32_0 = arith.constant 0 : i32
    %c0_i32_1 = arith.constant 0 : i32
    return %c0_i32, %c0_i32_0 : i32, i32
  }
  func.func @transform_13(%arg0: i32) -> (i32, i32) {
    %c0_i32 = arith.constant 0 : i32
    %c0_i32_0 = arith.constant 0 : i32
    %c0_i32_1 = arith.constant 0 : i32
    return %c0_i32, %c0_i32_0 : i32, i32
  }
  func.func @transform_14(%arg0: i32) -> (i32, i32) {
    %c0_i32 = arith.constant 0 : i32
    %c0_i32_0 = arith.constant 0 : i32
    %c0_i32_1 = arith.constant 0 : i32
    return %c0_i32, %c0_i32_0 : i32, i32
  }
  func.func @transform_15(%arg0: i32) -> (i32, i32) {
    %c0_i32 = arith.constant 0 : i32
    %c0_i32_0 = arith.constant 0 : i32
    %c0_i32_1 = arith.constant 0 : i32
    return %c0_i32, %c0_i32_0 : i32, i32
  }
  func.func @transform_16(%arg0: i32) -> (i32, i32) {
    %c0_i32 = arith.constant 0 : i32
    %c0_i32_0 = arith.constant 0 : i32
    %c0_i32_1 = arith.constant 0 : i32
    return %c0_i32, %c0_i32_0 : i32, i32
  }
  func.func @transform_17(%arg0: i32) -> (i32, i32) {
    %c0_i32 = arith.constant 0 : i32
    %c0_i32_0 = arith.constant 0 : i32
    %c0_i32_1 = arith.constant 0 : i32
    return %c0_i32, %c0_i32_0 : i32, i32
  }
  func.func @transform_18(%arg0: i32) -> (i32, i32) {
    %c0_i32 = arith.constant 0 : i32
    %c0_i32_0 = arith.constant 0 : i32
    return %arg0, %c0_i32 : i32, i32
  }
}

</mosaic_0001>

<bundles_post_ra>
// kernel: sac_actor_forward.1
= control target key start
LH: loop header
LB: loop body
LE: loop exit
PB: predicated region body
PF: predicated region fallthrough
CT: control target
= control target key end

     0   :  { %s4793_s0 = inlined_call_operand.vmem [shape: bf16[16,206], index: 0, kind: input, shape index: {}]   ;;  %s4794_s1 = inlined_call_operand.vmem [shape: bf16[16,206], index: 1, kind: input, shape index: {}]   ;;  %s4795_s2 = inlined_call_operand.vmem [shape: f32[16,1], index: 2, kind: input, shape index: {}]   ;;  %s4796_s3 = inlined_call_operand.hbm [shape: bf16[206,544], index: 3, kind: input, shape index: {}]   ;;  %s4797_s4 = inlined_call_operand.hbm [shape: bf16[206,544], index: 4, kind: input, shape index: {}]   ;;  %s4798_s5 = inlined_call_operand.vmem [shape: f32[1,544], index: 5, kind: input, shape index: {}]   ;;  %s4799_s6 = inlined_call_operand.hbm [shape: bf16[512,256], index: 6, kind: input, shape index: {}]   ;;  %s4800_s7 = inlined_call_operand.vmem [shape: bf16[256,128], index: 7, kind: input, shape index: {}]   ;;  %s4801_s8 = inlined_call_operand.vmem [shape: bf16[32,32], index: 8, kind: input, shape index: {}]   ;;  %s4802_s9 = inlined_call_operand.vmem [shape: bf16[32,16], index: 9, kind: input, shape index: {}]   ;;  %s4803_s10 = inlined_call_operand.vmem [shape: f32[1,8], index: 10, kind: input, shape index: {}]   ;;  %s4804_s11 = inlined_call_operand.vmem [shape: f32[8,8], index: 11, kind: input, shape index: {}]   ;;  %s4805_s12 = inlined_call_operand.hbm [shape: bf16[128,256], index: 12, kind: input, shape index: {}]   ;;  %s4806_s13 = inlined_call_operand.vmem [shape: bf16[24,256], index: 13, kind: input, shape index: {}]   ;;  %s4807_s14 = inlined_call_operand.hbm [shape: bf16[256,256], index: 14, kind: input, shape index: {}]   ;;  %s4808_s15 = inlined_call_operand.hbm [shape: bf16[256,256], index: 15, kind: input, shape index: {}]   ;;  %s4809_s16 = inlined_call_operand.vmem [shape: bf16[256,2], index: 16, kind: input, shape index: {}]   ;;  %s4810_s17 = inlined_call_operand.vmem [shape: f32[1,2432], index: 17, kind: input, shape index: {}]   ;;  %s4811_s18 = inlined_call_operand.vmem [shape: f32[16,2], index: 18, kind: output, shape index: {}]  }
   0x1   :  { %4815 = sst [smem:[#allocation16_spill]] %s4793_s0 }
   0x2   :  { %4816 = sst [smem:[#allocation17_spill]] %s4794_s1 }
   0x3   :  { %4817 = sst [smem:[#allocation18_spill]] %s4795_s2 }
   0x4   :  { %23 = vsyncpa [#allocation3], 0 }
   0x5   :  { %24 = vsyncpa [#allocation5], 0 }
   0x6   :  { %25 = vsyncpa [#allocation8], 0 }
   0x7   :  { %26 = vsyncpa [#allocation11], 0  ;;  %s4321_s27 = smov [#allocation4]  }
   0x8   :  { %s50_s28 = sshll.u32 %s4321_s27, 4  ;;  %s51_s28 = int_to_ptr.vmem [resolvable:$true] %s50_s28 }
   0x9   :  { %s4201_s29 = scalar_lea.vmem %s51_s28, 8320  ;;  %p4206_p1 = scmp.lt.s32.totalorder %s51_s28, %s51_s28 }
   0xa   :  { %p4202_p0 = scmp.ne.s32.totalorder %s51_s28, %s4201_s29  ;;  %p4207_p2 = scmp.lt.s32.totalorder %s4201_s29, %s4201_s29 }
   0xc   :  { %p4208_p3 = por %p4207_p2, %p4206_p1 }
   0xe   :  { %p4209_p4 = pnand %p4208_p3, %p4202_p0 }
  0x10   :  { %4212 = shalt.err (!%p4209_p4)
}
  0x11   :  { %s4322_s30 = smov 320   ;;  %s4323_s0 = smov 20  }
  0x12   :  { %56 = dma.hbm_to_vmem [thread:$0]  %s4797_s4, 8320, %s51_s28, [#allocation5], %s4322_s30, %s4322_s30, %s4323_s0  }
  0x13   :  { %s4324_s20 = smov [#allocation7]   ;;  %s4325_s22 = smov [#allocation2]  }
  0x14   :  { %s86_s21 = sshll.u32 %s4324_s20, 4  ;;  %s38_s2 = sshll.u32 %s4325_s22, 4  ;;  %s87_s21 = int_to_ptr.vmem [resolvable:$true] %s86_s21  ;;  %s39_s2 = int_to_ptr.vmem [resolvable:$true] %s38_s2 }
  0x15   :  { %s4221_s23 = scalar_lea.vmem %s87_s21, 2048  ;;  %p4226_p6 = scmp.lt.s32.totalorder %s87_s21, %s87_s21 }
  0x16   :  { %p4222_p5 = scmp.ne.s32.totalorder %s87_s21, %s4221_s23  ;;  %p4227_p7 = scmp.lt.s32.totalorder %s4221_s23, %s4221_s23 }
  0x18   :  { %p4228_p8 = por %p4227_p7, %p4226_p6 }
  0x1a   :  { %p4229_p9 = pnand %p4228_p8, %p4222_p5 }
  0x1c   :  { %4232 = shalt.err (!%p4229_p9)
}
  0x1d   :  { %s4326_s24 = smov 128   ;;  %s4327_s25 = smov 8  }
  0x1e   :  { %92 = dma.hbm_to_vmem [thread:$0]  %s4805_s12, 2048, %s87_s21, [#allocation8], %s4326_s24, %s4326_s24, %s4327_s25  }
  0x1f   :  { %s4241_s4 = scalar_lea.vmem %s39_s2, 8320  ;;  %p4246_p11 = scmp.lt.s32.totalorder %s39_s2, %s39_s2 }
  0x20   :  { %p4242_p10 = scmp.ne.s32.totalorder %s39_s2, %s4241_s4  ;;  %p4247_p12 = scmp.lt.s32.totalorder %s4241_s4, %s4241_s4 }
  0x22   :  { %p4248_p13 = por %p4247_p12, %p4246_p11 }
  0x24   :  { %p4249_p0 = pnand %p4248_p13, %p4242_p10 }
  0x26   :  { %4252 = shalt.err (!%p4249_p0)
}
  0x27   :  { %44 = dma.hbm_to_vmem [thread:$0]  %s4796_s3, 8320, %s39_s2, [#allocation3], %s4322_s30, %s4322_s30, %s4323_s0  }
  0x28   :  { %s4328_s19 = smov [#allocation6]   ;;  %s4329_s20 = smov [#allocation9]  }
  0x29   :  { %s64_s1 = sshll.u32 %s4328_s19, 4  ;;  %s100_s22 = sshll.u32 %s4329_s20, 4  ;;  %s65_s1 = int_to_ptr.vmem [resolvable:$true] %s64_s1  ;;  %s101_s22 = int_to_ptr.vmem [resolvable:$true] %s100_s22 }
  0x2a   :  { %s4261_s23 = scalar_lea.vmem %s65_s1, 8192  ;;  %p4266_p2 = scmp.lt.s32.totalorder %s65_s1, %s65_s1 }
  0x2b   :  { %p4262_p1 = scmp.ne.s32.totalorder %s65_s1, %s4261_s23  ;;  %p4267_p3 = scmp.lt.s32.totalorder %s4261_s23, %s4261_s23 }
  0x2d   :  { %p4268_p4 = por %p4267_p3, %p4266_p2 }
  0x2f   :  { %p4269_p5 = pnand %p4268_p4, %p4262_p1 }
  0x31   :  { %4272 = shalt.err (!%p4269_p5)
}
  0x32   :  { %70 = dma.hbm_to_vmem [thread:$0]  %s4799_s6, 8192, %s65_s1, [#allocation5], %s4326_s24, %s4326_s24, %s4327_s25  }
  0x33   :  { %s4281_s3 = scalar_lea.vmem %s101_s22, 4096  ;;  %p4286_p7 = scmp.lt.s32.totalorder %s101_s22, %s101_s22 }
  0x34   :  { %p4282_p6 = scmp.ne.s32.totalorder %s101_s22, %s4281_s3  ;;  %p4287_p8 = scmp.lt.s32.totalorder %s4281_s3, %s4281_s3 }
  0x36   :  { %p4288_p9 = por %p4287_p8, %p4286_p7 }
  0x38   :  { %p4289_p10 = pnand %p4288_p9, %p4282_p6 }
  0x3a   :  { %4292 = shalt.err (!%p4289_p10)
}
  0x3b   :  { %106 = dma.hbm_to_vmem [thread:$0]  %s4807_s14, 4096, %s101_s22, [#allocation8], %s4326_s24, %s4326_s24, %s4327_s25  }
  0x3c   :  { %s4330_s2 = smov [#allocation10]  }
  0x3d   :  { %s112_s26 = sshll.u32 %s4330_s2, 4  ;;  %s113_s26 = int_to_ptr.vmem [resolvable:$true] %s112_s26 }
  0x3e   :  { %s4301_s27 = scalar_lea.vmem %s113_s26, 4096  ;;  %p4306_p12 = scmp.lt.s32.totalorder %s113_s26, %s113_s26 }
  0x3f   :  { %p4302_p11 = scmp.ne.s32.totalorder %s113_s26, %s4301_s27  ;;  %p4307_p13 = scmp.lt.s32.totalorder %s4301_s27, %s4301_s27 }
  0x41   :  { %p4308_p0 = por %p4307_p13, %p4306_p12 }
  0x43   :  { %p4309_p1 = pnand %p4308_p0, %p4302_p11 }
  0x45   :  { %4312 = shalt.err (!%p4309_p1)
}
  0x46   :  { %118 = dma.hbm_to_vmem [thread:$0]  %s4808_s15, 4096, %s113_s26, [#allocation11], %s4326_s24, %s4326_s24, %s4327_s25  }
  0x47   :  { %4313 = dma.done.wait [#allocation3], 8320  }
  0x48   :  { %4314 = vsyncadd [#allocation3], 4294958976 }
  0x49   :  { %4315 = dma.done.wait [#allocation5], 16512  }
  0x4a   :  { %4316 = vsyncadd [#allocation5], 4294950784 }
  0x4b   :  { %4317 = dma.done.wait [#allocation8], 6144  }
  0x4c   :  { %4318 = vsyncadd [#allocation8], 4294961152 }
  0x4d   :  { %4319 = dma.done.wait [#allocation11], 4096  }
  0x4e   :  { %4320 = vsyncadd [#allocation11], 4294963200  ;;  %v4331_v0 = vmov 0   ;;  %v3748_v1 = vld [vmem:[#allocation4 + $0x11c] ss:$20 sps:$4 sm:$0xff]   ;;  %vm650_vm0 = vcmask 1046528  }
  0x4f   :  { %3729 = vset.pattern.permute.xlu0 %v4331_v0  ;;  %3730 = vset.pattern.permute.xlu1 %v4331_v0  ;;  %v3750_v2 = vld [vmem:[#allocation4 + $0x124] ss:$20 sps:$4 sm:$0xff]   ;;  %v3753_v4 = vld [vmem:[#allocation4 + $0x120] ss:$20 sps:$4 sm:$0xff]   ;;  %v3756_v6 = vld [vmem:[#allocation4 + $0xfc] ss:$20 sps:$4 sm:$0xff]  }
  0x50   :  { %666 = vmatprep.subr.bf16.mxu0 %v3748_v1  ;;  %v3752_v3 = vld [vmem:[#allocation4 + $0x118] ss:$20 sps:$4 sm:$0xff]   ;;  %709 = vmatprep.subr.bf16.mxu1 %v3750_v2  ;;  %v3754_v5 = vld [vmem:[#allocation4 + $0xf4] ss:$20 sps:$4 sm:$0xff]   ;;  %v3758_v7 = vld [vmem:[#allocation4 + $0xf0] ss:$20 sps:$4 sm:$0xff]  }
  0x51   :  { %667 = vmatpush1.bf16.msra.mxu0 %v3752_v3  ;;  %710 = vmatpush1.bf16.msra.mxu1 %v3753_v4  ;;  %v3759_v8 = vld [vmem:[#allocation4 + $0xf8] ss:$20 sps:$4 sm:$0xff]   ;;  %v3762_v10 = vld [vmem:[#allocation4 + $0xd4] ss:$20 sps:$4 sm:$0xff]   ;;  %v3765_v12 = vld [vmem:[#allocation4 + $0xd0] ss:$20 sps:$4 sm:$0xff]  }
  0x52   :  { %668 = vmatprep.subr.bf16.mxu0 %v3754_v5  ;;  %711 = vmatprep.subr.bf16.mxu1 %v3756_v6  ;;  %v3760_v9 = vld [vmem:[#allocation4 + $0xcc] ss:$20 sps:$4 sm:$0xff]   ;;  %v3764_v11 = vld [vmem:[#allocation4 + $0xc8] ss:$20 sps:$4 sm:$0xff]   ;;  %v3766_v13 = vld [vmem:[#allocation4 + $0xa4] ss:$20 sps:$4 sm:$0xff]  }
  0x53   :  { %v3768_v14 = vld [vmem:[#allocation4 + $0xac] ss:$20 sps:$4 sm:$0xff]   ;;  %v3771_v16 = vld [vmem:[#allocation4 + $0xa8] ss:$20 sps:$4 sm:$0xff]   ;;  %v3774_v18 = vld [vmem:[#allocation4 + $0x84] ss:$20 sps:$4 sm:$0xff]  }
  0x54   :  { %v3770_v15 = vld [vmem:[#allocation4 + $0xa0] ss:$20 sps:$4 sm:$0xff]   ;;  %v3772_v17 = vld [vmem:[#allocation4 + $0x7c] ss:$20 sps:$4 sm:$0xff]   ;;  %v3776_v19 = vld [vmem:[#allocation4 + $0x78] ss:$20 sps:$4 sm:$0xff]  }
  0x55   :  { %669 = vmatpush1.bf16.msra.mxu0 %v3758_v7  ;;  %712 = vmatpush1.bf16.msra.mxu1 %v3759_v8  ;;  %v3777_v20 = vld [vmem:[#allocation4 + $0x80] ss:$20 sps:$4 sm:$0xff]   ;;  %v3780_v22 = vld [vmem:[#allocation4 + $0x5c] ss:$20 sps:$4 sm:$0xff]   ;;  %v3783_v24 = vld [vmem:[#allocation4 + $0x58] ss:$20 sps:$4 sm:$0xff]  }
  0x56   :  { %670 = vmatprep.subr.bf16.mxu0 %v3760_v9  ;;  %713 = vmatprep.subr.bf16.mxu1 %v3762_v10  ;;  %v3778_v21 = vld [vmem:[#allocation4 + $0x54] ss:$20 sps:$4 sm:$0xff]   ;;  %v3782_v23 = vld [vmem:[#allocation4 + $0x50] ss:$20 sps:$4 sm:$0xff]   ;;  %v3784_v25 = vld [vmem:[#allocation4 + $0x2c] ss:$20 sps:$4 sm:$0xff]  }
  0x57   :  { %v3786_v26 = vld [vmem:[#allocation4 + $0x34] ss:$20 sps:$4 sm:$0xff]   ;;  %v3789_v28 = vld [vmem:[#allocation4 + $0x30] ss:$20 sps:$4 sm:$0xff]   ;;  %v3792_v30 = vld [vmem:[#allocation4 + $0xc] ss:$20 sps:$4 sm:$0xff]  }
  0x58   :  { %v3788_v27 = vld [vmem:[#allocation4 + $0x28] ss:$20 sps:$4 sm:$0xff]   ;;  %v3790_v29 = vld [vmem:[#allocation4 + $0x4] ss:$20 sps:$4 sm:$0xff]   ;;  %v3794_v31 = vld [vmem:[#allocation4] ss:$20 sps:$4 sm:$0xff]  }
  0x59   :  { %671 = vmatpush1.bf16.msra.mxu0 %v3764_v11  ;;  %714 = vmatpush1.bf16.msra.mxu1 %v3765_v12  ;;  %v3795_v32 = vld [vmem:[#allocation4 + $0x8] ss:$20 sps:$4 sm:$0xff]   ;;  %v3796_v33 = vld [vmem:[#allocation4 + $0x1e4] ss:$20 sps:$4 sm:$0x7f]   ;;  %s4818_s24 = sld [smem:[#allocation17_spill]] }
  0x5a   :  { %672 = vmatprep.subr.bf16.mxu0 %v3766_v13  ;;  %715 = vmatprep.subr.bf16.mxu1 %v3768_v14  ;;  %v3798_v34 = vld [vmem:[#allocation4 + $0x1ec] ss:$20 sps:$4 sm:$0x7f]   ;;  %v3801_v36 = vld [vmem:[#allocation4 + $0x1e8] ss:$20 sps:$4 sm:$0x7f]  }
  0x5b   :  { %v3800_v35 = vld [vmem:[#allocation4 + $0x1e0] ss:$20 sps:$4 sm:$0x7f]   ;;  %v3802_v37 = vld [vmem:[#allocation4 + $0x1bc] ss:$20 sps:$4 sm:$0xff]   ;;  %v658_v39 = vsel %vm650_vm0, %v3801_v36, 0 }
  0x5c   :  { %v652_v38 = vsel %vm650_vm0, %v3800_v35, 0  ;;  %v3804_v40 = vld [vmem:[#allocation4 + $0x1c4] ss:$20 sps:$4 sm:$0xff]   ;;  %vm646_vm1 = vcmask 637952   ;;  %v3807_v43 = vld [vmem:[#allocation4 + $0x1c0] ss:$20 sps:$4 sm:$0xff]  }
  0x5d   :  { %673 = vmatpush1.bf16.msra.mxu0 %v3770_v15  ;;  %716 = vmatpush1.bf16.msra.mxu1 %v3771_v16  ;;  %v3806_v41 = vld [vmem:[#allocation4 + $0x1b8] ss:$20 sps:$4 sm:$0xff]   ;;  %v3808_v44 = vld [vmem:[#allocation4 + $0x194] ss:$20 sps:$4 sm:$0xff]   ;;  %v3810_v45 = vld [vmem:[#allocation4 + $0x19c] ss:$20 sps:$4 sm:$0xff]  }
  0x5e   :  { %674 = vmatprep.subr.bf16.mxu0 %v3772_v17  ;;  %717 = vmatprep.subr.bf16.mxu1 %v3774_v18  ;;  %v3812_v46 = vld [vmem:[#allocation4 + $0x190] ss:$20 sps:$4 sm:$0xff]   ;;  %v3813_v47 = vld [vmem:[#allocation4 + $0x198] ss:$20 sps:$4 sm:$0xff]   ;;  %v3816_v49 = vld [vmem:[#allocation4 + $0x174] ss:$20 sps:$4 sm:$0xff]  }
  0x5f   :  { %v3826_v42 = vld [vmem:[%s4818_s24 + $0x4] ss:$8 sps:$4 sm:$0xff]   ;;  %v3814_v48 = vld [vmem:[#allocation4 + $0x16c] ss:$20 sps:$4 sm:$0xff]   ;;  %v3831_v56 = vld [vmem:[#allocation2 + $0x11c] ss:$20 sps:$4 sm:$0xff]  }
  0x60   :  { %3371 = vmatprep.mubr.msk.bf16.mxu0 %vm646_vm1, %v3826_v42  ;;  %3373 = vmatprep.mubr.msk.bf16.mxu1 %vm646_vm1, %v3826_v42  ;;  %v3818_v50 = vld [vmem:[#allocation4 + $0x168] ss:$20 sps:$4 sm:$0xff]   ;;  %v3819_v51 = vld [vmem:[#allocation4 + $0x170] ss:$20 sps:$4 sm:$0xff]   ;;  %v3822_v53 = vld [vmem:[#allocation4 + $0x14c] ss:$20 sps:$4 sm:$0xff]  }
  0x61   :  { %675 = vmatpush1.bf16.msra.mxu0 %v3776_v19  ;;  %718 = vmatpush1.bf16.msra.mxu1 %v3777_v20  ;;  %v3820_v52 = vld [vmem:[#allocation4 + $0x144] ss:$20 sps:$4 sm:$0xff]   ;;  %v3824_v54 = vld [vmem:[#allocation4 + $0x140] ss:$20 sps:$4 sm:$0xff]   ;;  %v3825_v55 = vld [vmem:[#allocation4 + $0x148] ss:$20 sps:$4 sm:$0xff]  }
  0x62   :  { %676 = vmatprep.subr.bf16.mxu0 %v3778_v21  ;;  %719 = vmatprep.subr.bf16.mxu1 %v3780_v22  ;;  %v4481_v57 = vld [vmem:[%s4818_s24] ss:$8 sps:$4 sm:$0xff]   ;;  %v3829_v58 = vld [vmem:[#allocation2 + $0x118] ss:$20 sps:$4 sm:$0xff]   ;;  %v3832_v59 = vld [vmem:[#allocation4 + $0x128] ss:$20 sps:$4 sm:$0xff]  }
  0x63   :  { %v3835_v60 = vld [vmem:[#allocation2 + $0xf4] ss:$20 sps:$4 sm:$0xff]   ;;  %v3833_v61 = vld [vmem:[#allocation2 + $0xf0] ss:$20 sps:$4 sm:$0xff]   ;;  %v3839_v63 = vld [vmem:[#allocation2 + $0xcc] ss:$20 sps:$4 sm:$0xff]  }
  0x64   :  { %v3836_v62 = vld [vmem:[#allocation4 + $0x100] ss:$20 sps:$4 sm:$0xff]   ;;  %v3840_v2 = vld [vmem:[#allocation4 + $0xd8] ss:$20 sps:$4 sm:$0xff]   ;;  %v3843_v3 = vld [vmem:[#allocation2 + $0xa4] ss:$20 sps:$4 sm:$0xff]  }
  0x65   :  { %677 = vmatpush1.bf16.msra.mxu0 %v3782_v23  ;;  %720 = vmatpush1.bf16.msra.mxu1 %v3783_v24  ;;  %v3837_v1 = vld [vmem:[#allocation2 + $0xc8] ss:$20 sps:$4 sm:$0xff]   ;;  %v3841_v4 = vld [vmem:[#allocation2 + $0xa0] ss:$20 sps:$4 sm:$0xff]   ;;  %v3844_v5 = vld [vmem:[#allocation4 + $0xb0] ss:$20 sps:$4 sm:$0xff]  }
  0x66   :  { %678 = vmatprep.subr.bf16.mxu0 %v3784_v25  ;;  %721 = vmatprep.subr.bf16.mxu1 %v3786_v26  ;;  %v3847_v6 = vld [vmem:[#allocation2 + $0x7c] ss:$20 sps:$4 sm:$0xff]   ;;  %v3845_v7 = vld [vmem:[#allocation2 + $0x78] ss:$20 sps:$4 sm:$0xff]   ;;  %s4819_s1 = sld [smem:[#allocation16_spill]]  ;;  %vm4340_vm2 = vmmov 0  }
  0x67   :  { %v3848_v8 = vld [vmem:[#allocation4 + $0x88] ss:$20 sps:$4 sm:$0xff]   ;;  %v3851_v10 = vld [vmem:[#allocation2 + $0x54] ss:$20 sps:$4 sm:$0xff]   ;;  %v3855_v13 = vld [vmem:[#allocation2 + $0x2c] ss:$20 sps:$4 sm:$0xff]  }
  0x68   :  { %v3849_v11 = vld [vmem:[#allocation2 + $0x50] ss:$20 sps:$4 sm:$0xff]   ;;  %v3852_v12 = vld [vmem:[#allocation4 + $0x60] ss:$20 sps:$4 sm:$0xff]   ;;  %v3856_v15 = vld [vmem:[#allocation4 + $0x38] ss:$20 sps:$4 sm:$0xff]  }
  0x69   :  { %679 = vmatpush1.bf16.msra.mxu0 %v3788_v27  ;;  %722 = vmatpush1.bf16.msra.mxu1 %v3789_v28  ;;  %v3853_v14 = vld [vmem:[#allocation2 + $0x28] ss:$20 sps:$4 sm:$0xff]   ;;  %v3859_v16 = vld [vmem:[#allocation2 + $0x4] ss:$20 sps:$4 sm:$0xff]   ;;  %v3857_v17 = vld [vmem:[#allocation2] ss:$20 sps:$4 sm:$0xff]  }
  0x6a   :  { %680 = vmatprep.subr.bf16.mxu0 %v3790_v29  ;;  %723 = vmatprep.subr.bf16.mxu1 %v3792_v30  ;;  %v3860_v18 = vld [vmem:[#allocation4 + $0x10] ss:$20 sps:$4 sm:$0xff]   ;;  %v3864_v21 = vld [vmem:[#allocation2 + $0x1e0] ss:$20 sps:$4 sm:$0x7f]   ;;  %s4820_s23 = sld [smem:[#allocation18_spill]] }
  0x6b   :  { %v3861_v19 = vld [vmem:[#allocation2 + $0x1e4] ss:$20 sps:$4 sm:$0x7f]   ;;  %v1139_v23 = vsel %vm650_vm0, %v3864_v21, 0  ;;  %v3867_v24 = vld [vmem:[#allocation2 + $0x1bc] ss:$20 sps:$4 sm:$0xff]  }
  0x6c   :  { %v4493_v9 = vld [vmem:[%s4819_s1 + $0x4] ss:$8 sps:$4 sm:$0xff]   ;;  %v3871_v27 = vld [vmem:[#allocation2 + $0x194] ss:$20 sps:$4 sm:$0xff]   ;;  %vm2078_vm3 = vcmask 261120   ;;  %s4341_s25 = smov 16  }
  0x6d   :  { %681 = vmatpush1.bf16.msra.mxu0 %v3794_v31  ;;  %724 = vmatpush1.bf16.msra.mxu1 %v3795_v32  ;;  %v3863_v20 = vld [vmem:[#allocation4 + $0x1f0] ss:$20 sps:$4 sm:$0x7f]   ;;  %v3868_v26 = vld [vmem:[#allocation4 + $0x1c8] ss:$20 sps:$4 sm:$0xff]   ;;  %vm2406_vm4 = vcmask 1043456  }
  0x6e   :  { %3370 = vmatprep.subr.msk.bf16.mxu0 %vm650_vm0, %v3796_v33  ;;  %3372 = vmatprep.subr.msk.bf16.mxu1 %vm650_vm0, %v3798_v34  ;;  %v664_v22 = vsel %vm650_vm0, %v3863_v20, 0  ;;  %v3865_v25 = vld [vmem:[#allocation2 + $0x1b8] ss:$20 sps:$4 sm:$0xff]   ;;  %v3869_v28 = vld [vmem:[#allocation2 + $0x190] ss:$20 sps:$4 sm:$0xff]   ;;  %vm2363_vm5 = vcmask 130048  }
  0x6f   :  { %v3872_v29 = vld [vmem:[#allocation4 + $0x1a0] ss:$20 sps:$4 sm:$0xff]   ;;  %v3875_v30 = vld [vmem:[#allocation2 + $0x16c] ss:$20 sps:$4 sm:$0xff]   ;;  %v3879_v33 = vld [vmem:[#allocation2 + $0x144] ss:$20 sps:$4 sm:$0xff]  }
  0x70   :  { %v3873_v31 = vld [vmem:[#allocation2 + $0x168] ss:$20 sps:$4 sm:$0xff]   ;;  %v3876_v32 = vld [vmem:[#allocation4 + $0x178] ss:$20 sps:$4 sm:$0xff]   ;;  %v3880_v35 = vld [vmem:[#allocation4 + $0x150] ss:$20 sps:$4 sm:$0xff]  }
  0x71   :  { %689 = vmatpush2.bf16.msra.mxu0 %v652_v38  ;;  %732 = vmatpush2.bf16.msra.mxu1 %v658_v39  ;;  %v3877_v34 = vld [vmem:[#allocation2 + $0x140] ss:$20 sps:$4 sm:$0xff]   ;;  %v3886_v36 = vld [vmem:[#allocation2 + $0x124] ss:$20 sps:$4 sm:$0xff]   ;;  %v147_v39 = vld [vmem:[%s4820_s23 + $0x8] sm:$0xff]  ;;  %vm2402_vm6 = vcmask 195584  }
  0x72   :  { %690 = vmatprep.subr.bf16.mxu0 %v3802_v37  ;;  %733 = vmatprep.subr.bf16.mxu1 %v3804_v40  ;;  %v146_v37 = vld [vmem:[%s4820_s23] sm:$0xff]  ;;  %v3939_v20 = vld [vmem:[#allocation6 + $0x60] ss:$8 sps:$4 sm:$0xff]   ;;  %vm3292_vm8 = vcmask 15360  }
  0x73   :  { %v4515_v38 = vld [vmem:[%s4819_s1] ss:$8 sps:$4 sm:$0xff]   ;;  %1283 = vperm.xlu0 %3729, %v146_v37   ;;  %v3944_v21 = vld [vmem:[#allocation6 + $0x54] ss:$8 sps:$4 sm:$0xff]  }
  0x74   :  { %v3884_v40 = vld [vmem:[#allocation2 + $0x120] ss:$20 sps:$4 sm:$0xff]   ;;  %v3989_v37 = vld [vmem:[#allocation6 + $0x154] ss:$8 sps:$4 sm:$0xff]  }
  0x75   :  { %691 = vmatpush2.bf16.msra.mxu0 %v3806_v41  ;;  %734 = vmatpush2.bf16.msra.mxu1 %v3807_v43  ;;  %v3887_v41 = vld [vmem:[#allocation2 + $0x128] ss:$20 sps:$4 sm:$0xff]   ;;  %v3888_v43 = vld [vmem:[#allocation2 + $0xf8] ss:$20 sps:$4 sm:$0xff]  }
  0x76   :  { %692 = vmatprep.subr.bf16.mxu0 %v3808_v44  ;;  %735 = vmatprep.subr.bf16.mxu1 %v3810_v45  ;;  %v3891_v44 = vld [vmem:[#allocation2 + $0x100] ss:$20 sps:$4 sm:$0xff]  }
  0x77   :  { %1288 = vperm.xlu0 %3729, %v147_v39   ;;  %v3894_v45 = vld [vmem:[#allocation2 + $0xd4] ss:$20 sps:$4 sm:$0xff]  }
  0x78   :  { %v3987_v39 = vld [vmem:[#allocation6 + $0x150] ss:$8 sps:$4 sm:$0xff]  }
  0x79   :  { %693 = vmatpush2.bf16.msra.mxu0 %v3812_v46  ;;  %736 = vmatpush2.bf16.msra.mxu1 %v3813_v47  ;;  %v3892_v46 = vld [vmem:[#allocation2 + $0xd0] ss:$20 sps:$4 sm:$0xff]   ;;  %v3895_v47 = vld [vmem:[#allocation2 + $0xd8] ss:$20 sps:$4 sm:$0xff]  }
  0x7a   :  { %694 = vmatprep.subr.bf16.mxu0 %v3814_v48  ;;  %737 = vmatprep.subr.bf16.mxu1 %v3816_v49  ;;  %v3898_v48 = vld [vmem:[#allocation2 + $0xac] ss:$20 sps:$4 sm:$0xff]   ;;  %v3896_v49 = vld [vmem:[#allocation2 + $0xa8] ss:$20 sps:$4 sm:$0xff]  }
  0x7d   :  { %695 = vmatpush2.bf16.msra.mxu0 %v3818_v50  ;;  %738 = vmatpush2.bf16.msra.mxu1 %v3819_v51  ;;  %v3899_v50 = vld [vmem:[#allocation2 + $0xb0] ss:$20 sps:$4 sm:$0xff]  }
  0x7e   :  { %696 = vmatprep.subr.bf16.mxu0 %v3820_v52  ;;  %739 = vmatprep.subr.bf16.mxu1 %v3822_v53  ;;  %v3902_v51 = vld [vmem:[#allocation2 + $0x84] ss:$20 sps:$4 sm:$0xff]   ;;  %v3900_v52 = vld [vmem:[#allocation2 + $0x80] ss:$20 sps:$4 sm:$0xff]   ;;  %v3903_v53 = vld [vmem:[#allocation2 + $0x88] ss:$20 sps:$4 sm:$0xff]  }
  0x81   :  { %697 = vmatpush2.bf16.msra.mxu0 %v3824_v54  ;;  %740 = vmatpush2.bf16.msra.mxu1 %v3825_v55  ;;  %v3906_v54 = vld [vmem:[#allocation2 + $0x5c] ss:$20 sps:$4 sm:$0xff]   ;;  %v3904_v55 = vld [vmem:[#allocation2 + $0x58] ss:$20 sps:$4 sm:$0xff]  }
  0x82   :  { %752 = vmatprep.subr.bf16.mxu0 %v4331_v0  ;;  %1153 = vmatprep.subr.bf16.mxu1 %v3831_v56  ;;  %v3907_v56 = vld [vmem:[#allocation2 + $0x60] ss:$20 sps:$4 sm:$0xff]  }
  0x84   :  { %699 = vmatmul.mubr.bf16.vlgmr.msra.gmra.mxu0 %v4481_v57  ;;  %742 = vmatmul.mubr.bf16.vlgmr.msra.gmra.mxu1 %v4481_v57 }
  0x85   :  { %753 = vmatpush1.bf16.msra.mxu0 %v3832_v59  ;;  %1154 = vmatpush1.bf16.msra.mxu1 %v3829_v58  ;;  %v3908_v58 = vld [vmem:[#allocation2 + $0x30] ss:$20 sps:$4 sm:$0xff]   ;;  %v3911_v59 = vld [vmem:[#allocation2 + $0x38] ss:$20 sps:$4 sm:$0xff]  }
  0x86   :  { %754 = vmatprep.subr.bf16.mxu0 %v4331_v0  ;;  %1155 = vmatprep.subr.bf16.mxu1 %v3835_v60  ;;  %v3918_v60 = vld [vmem:[#allocation2 + $0x1e8] ss:$20 sps:$4 sm:$0x7f]  }
  0x87   :  { %3374 = vmatprep.mubr.msk.bf16.mxu0 %vm646_vm1, %v3826_v42  ;;  %3443 = vmatprep.mubr.msk.bf16.mxu1 %vm646_vm1, %v4493_v9  ;;  %v3890_v42 = vld [vmem:[#allocation2 + $0xfc] ss:$20 sps:$4 sm:$0xff]  }
  0x89   :  { %755 = vmatpush1.bf16.msra.mxu0 %v3836_v62  ;;  %1156 = vmatpush1.bf16.msra.mxu1 %v3833_v61  ;;  %v3919_v61 = vld [vmem:[#allocation2 + $0x1f0] ss:$20 sps:$4 sm:$0x7f]   ;;  %v3914_v62 = vld [vmem:[#allocation2 + $0xc] ss:$20 sps:$4 sm:$0xff]  }
  0x8a   :  { %756 = vmatprep.subr.bf16.mxu0 %v4331_v0  ;;  %1157 = vmatprep.subr.bf16.mxu1 %v3839_v63  ;;  %v3912_v63 = vld [vmem:[#allocation2 + $0x8] ss:$20 sps:$4 sm:$0xff]  }
  0x8d   :  { %757 = vmatpush1.bf16.msra.mxu0 %v3840_v2  ;;  %1158 = vmatpush1.bf16.msra.mxu1 %v3837_v1  ;;  %v3915_v1 = vld [vmem:[#allocation2 + $0x10] ss:$20 sps:$4 sm:$0xff]   ;;  %v3916_v2 = vld [vmem:[#allocation2 + $0x1ec] ss:$20 sps:$4 sm:$0x7f]  }
  0x8e   :  { %758 = vmatprep.subr.bf16.mxu0 %v4331_v0  ;;  %1159 = vmatprep.subr.bf16.mxu1 %v3843_v3  ;;  %v1145_v3 = vsel %vm650_vm0, %v3918_v60, 0  ;;  %v3972_v60 = vld [vmem:[#allocation6 + $0xb0] ss:$8 sps:$4 sm:$0xff]  }
  0x91   :  { %759 = vmatpush1.bf16.msra.mxu0 %v3844_v5  ;;  %1160 = vmatpush1.bf16.msra.mxu1 %v3841_v4  ;;  %v1151_v4 = vsel %vm650_vm0, %v3919_v61, 0  ;;  %v3922_v5 = vld [vmem:[#allocation2 + $0x1c4] ss:$20 sps:$4 sm:$0xff]   ;;  %v3980_v61 = vld [vmem:[#allocation6 + $0xa4] ss:$8 sps:$4 sm:$0xff]  }
  0x92   :  { %760 = vmatprep.subr.bf16.mxu0 %v4331_v0  ;;  %1161 = vmatprep.subr.bf16.mxu1 %v3847_v6  ;;  %v3920_v6 = vld [vmem:[#allocation2 + $0x1c0] ss:$20 sps:$4 sm:$0xff]  }
  0x95   :  { %761 = vmatpush1.bf16.msra.mxu0 %v3848_v8  ;;  %1162 = vmatpush1.bf16.msra.mxu1 %v3845_v7  ;;  %v3923_v7 = vld [vmem:[#allocation2 + $0x1c8] ss:$20 sps:$4 sm:$0xff]  }
  0x96   :  { %762 = vmatprep.subr.bf16.mxu0 %v4331_v0  ;;  %1163 = vmatprep.subr.bf16.mxu1 %v3851_v10  ;;  %v3926_v8 = vld [vmem:[#allocation2 + $0x19c] ss:$20 sps:$4 sm:$0xff]   ;;  %v3927_v10 = vld [vmem:[#allocation2 + $0x1a0] ss:$20 sps:$4 sm:$0xff]  }
  0x99   :  { %763 = vmatpush1.bf16.msra.mxu0 %v3852_v12  ;;  %1164 = vmatpush1.bf16.msra.mxu1 %v3849_v11  ;;  %v3930_v11 = vld [vmem:[#allocation2 + $0x174] ss:$20 sps:$4 sm:$0xff]   ;;  %v3928_v12 = vld [vmem:[#allocation2 + $0x170] ss:$20 sps:$4 sm:$0xff]  }
  0x9a   :  { %764 = vmatprep.subr.bf16.mxu0 %v4331_v0  ;;  %1165 = vmatprep.subr.bf16.mxu1 %v3855_v13  ;;  %v3931_v13 = vld [vmem:[#allocation2 + $0x178] ss:$20 sps:$4 sm:$0xff]  }
  0x9d   :  { %765 = vmatpush1.bf16.msra.mxu0 %v3856_v15  ;;  %1166 = vmatpush1.bf16.msra.mxu1 %v3853_v14  ;;  %v3934_v14 = vld [vmem:[#allocation2 + $0x14c] ss:$20 sps:$4 sm:$0xff]   ;;  %v3932_v15 = vld [vmem:[#allocation2 + $0x148] ss:$20 sps:$4 sm:$0xff]  }
  0x9e   :  { %766 = vmatprep.subr.bf16.mxu0 %v4331_v0  ;;  %1167 = vmatprep.subr.bf16.mxu1 %v3859_v16  ;;  %v3935_v16 = vld [vmem:[#allocation2 + $0x150] ss:$20 sps:$4 sm:$0xff]  }
  0xa1   :  { %767 = vmatpush1.bf16.msra.mxu0 %v3860_v18  ;;  %1168 = vmatpush1.bf16.msra.mxu1 %v3857_v17  ;;  %v3938_v17 = vld [vmem:[#allocation6 + $0x74] ss:$8 sps:$4 sm:$0xff]   ;;  %v3936_v18 = vld [vmem:[#allocation6 + $0x70] ss:$8 sps:$4 sm:$0xff]  }
  0xa2   :  { %774 = vmatprep.subr.bf16.mxu0 %v4331_v0  ;;  %3442 = vmatprep.subr.msk.bf16.mxu1 %vm650_vm0, %v3861_v19  ;;  %v3941_v19 = vld [vmem:[#allocation6 + $0x64] ss:$8 sps:$4 sm:$0xff]  }
  0xa5   :  { %775 = vmatpush2.bf16.msra.mxu0 %v664_v22  ;;  %1176 = vmatpush2.bf16.msra.mxu1 %v1139_v23  ;;  %v3942_v22 = vld [vmem:[#allocation6 + $0x50] ss:$8 sps:$4 sm:$0xff]   ;;  %v3947_v23 = vld [vmem:[#allocation6 + $0x44] ss:$8 sps:$4 sm:$0xff]  }
  0xa6   :  { %776 = vmatprep.subr.bf16.mxu0 %v4331_v0  ;;  %1177 = vmatprep.subr.bf16.mxu1 %v3867_v24  ;;  %v3945_v24 = vld [vmem:[#allocation6 + $0x40] ss:$8 sps:$4 sm:$0xff]  }
  0xa9   :  { %777 = vmatpush2.bf16.msra.mxu0 %v3868_v26  ;;  %1178 = vmatpush2.bf16.msra.mxu1 %v3865_v25  ;;  %v3950_v25 = vld [vmem:[#allocation6 + $0x34] ss:$8 sps:$4 sm:$0xff]   ;;  %v3948_v26 = vld [vmem:[#allocation6 + $0x30] ss:$8 sps:$4 sm:$0xff]  }
  0xaa   :  { %778 = vmatprep.subr.bf16.mxu0 %v4331_v0  ;;  %1179 = vmatprep.subr.bf16.mxu1 %v3871_v27  ;;  %v3953_v27 = vld [vmem:[#allocation6 + $0x24] ss:$8 sps:$4 sm:$0xff]  }
  0xad   :  { %779 = vmatpush2.bf16.msra.mxu0 %v3872_v29  ;;  %1180 = vmatpush2.bf16.msra.mxu1 %v3869_v28  ;;  %v3951_v28 = vld [vmem:[#allocation6 + $0x20] ss:$8 sps:$4 sm:$0xff]   ;;  %v3977_v29 = vld [vmem:[#allocation6 + $0x174] ss:$8 sps:$4 sm:$0xff]  }
  0xae   :  { %780 = vmatprep.subr.bf16.mxu0 %v4331_v0  ;;  %1181 = vmatprep.subr.bf16.mxu1 %v3875_v30  ;;  %v3956_v30 = vld [vmem:[#allocation6 + $0x14] ss:$8 sps:$4 sm:$0xff]  }
  0xb1   :  { %781 = vmatpush2.bf16.msra.mxu0 %v3876_v32  ;;  %1182 = vmatpush2.bf16.msra.mxu1 %v3873_v31  ;;  %v3975_v31 = vld [vmem:[#allocation6 + $0x170] ss:$8 sps:$4 sm:$0xff]  }
  0xb2   :  { %782 = vmatprep.subr.bf16.mxu0 %v4331_v0  ;;  %1183 = vmatprep.subr.bf16.mxu1 %v3879_v33  ;;  %v3954_v32 = vld [vmem:[#allocation6 + $0x10] ss:$8 sps:$4 sm:$0xff]   ;;  %v3983_v33 = vld [vmem:[#allocation6 + $0x164] ss:$8 sps:$4 sm:$0xff]  }
  0xb5   :  { %783 = vmatpush2.bf16.msra.mxu0 %v3880_v35  ;;  %1184 = vmatpush2.bf16.msra.mxu1 %v3877_v34  ;;  %v3959_v34 = vld [vmem:[#allocation6 + $0x4] ss:$8 sps:$4 sm:$0xff]   ;;  %v3981_v35 = vld [vmem:[#allocation6 + $0x160] ss:$8 sps:$4 sm:$0xff]  }
  0xb6   :  { %1196 = vmatprep.subr.bf16.mxu0 %v3886_v36  ;;  %1239 = vmatprep.subr.bf16.mxu1 %v4331_v0  ;;  %v3957_v36 = vld [vmem:[#allocation6] ss:$8 sps:$4 sm:$0xff]  }
  0xb8   :  { %785 = vmatmul.mubr.bf16.vlgmr.msra.gmra.mxu0 %v4481_v57  ;;  %1186 = vmatmul.mubr.bf16.vlgmr.msra.gmra.mxu1 %v4515_v38  ;;  %v3910_v57 = vld [vmem:[#allocation2 + $0x34] ss:$20 sps:$4 sm:$0xff]  }
  0xb9   :  { %1197 = vmatpush1.bf16.msra.mxu0 %v3884_v40  ;;  %1240 = vmatpush1.bf16.msra.mxu1 %v3887_v41  ;;  %v3995_v40 = vld [vmem:[#allocation6 + $0x144] ss:$8 sps:$4 sm:$0xff]   ;;  %v3960_v41 = vld [vmem:[#allocation6 + $0xf0] ss:$8 sps:$4 sm:$0xff]  }
  0xba   :  { %1198 = vmatprep.subr.bf16.mxu0 %v3890_v42  ;;  %1241 = vmatprep.subr.bf16.mxu1 %v4331_v0  ;;  %v3993_v42 = vld [vmem:[#allocation6 + $0x140] ss:$8 sps:$4 sm:$0xff]  }
  0xbb   :  { %3445 = vmatprep.mubr.msk.bf16.mxu0 %vm646_vm1, %v4493_v9  ;;  %3446 = vmatprep.mubr.msk.bf16.mxu1 %vm646_vm1, %v4493_v9  ;;  %v3924_v9 = vld [vmem:[#allocation2 + $0x198] ss:$20 sps:$4 sm:$0xff]  }
  0xbd   :  { %1199 = vmatpush1.bf16.msra.mxu0 %v3888_v43  ;;  %1242 = vmatpush1.bf16.msra.mxu1 %v3891_v44  ;;  %v3965_v43 = vld [vmem:[#allocation6 + $0xe4] ss:$8 sps:$4 sm:$0xff]   ;;  %v3998_v44 = vld [vmem:[#allocation6 + $0x134] ss:$8 sps:$4 sm:$0xff]  }
  0xbe   :  { %1200 = vmatprep.subr.bf16.mxu0 %v3894_v45  ;;  %1243 = vmatprep.subr.bf16.mxu1 %v4331_v0  ;;  %v3996_v45 = vld [vmem:[#allocation6 + $0x130] ss:$8 sps:$4 sm:$0xff]  }
  0xc1   :  { %1201 = vmatpush1.bf16.msra.mxu0 %v3892_v46  ;;  %1244 = vmatpush1.bf16.msra.mxu1 %v3895_v47  ;;  %v4332_v46 = vmov 1   ;;  %v4001_v47 = vld [vmem:[#allocation6 + $0x124] ss:$8 sps:$4 sm:$0xff]  }
  0xc2   :  { %1202 = vmatprep.subr.bf16.mxu0 %v3898_v48  ;;  %1245 = vmatprep.subr.bf16.mxu1 %v4331_v0  ;;  %v3963_v48 = vld [vmem:[#allocation6 + $0xe0] ss:$8 sps:$4 sm:$0xff]  }
  0xc3   :  { %3731 = vset.pattern.permute.xlu0 %v4332_v46 }
  0xc5   :  { %1203 = vmatpush1.bf16.msra.mxu0 %v3896_v49  ;;  %1246 = vmatpush1.bf16.msra.mxu1 %v3899_v50  ;;  %v3968_v49 = vld [vmem:[#allocation6 + $0xd4] ss:$8 sps:$4 sm:$0xff]   ;;  %v3999_v50 = vld [vmem:[#allocation6 + $0x120] ss:$8 sps:$4 sm:$0xff]  }
  0xc6   :  { %1204 = vmatprep.subr.bf16.mxu0 %v3902_v51  ;;  %1247 = vmatprep.subr.bf16.mxu1 %v4331_v0  ;;  %v4004_v51 = vld [vmem:[#allocation6 + $0x114] ss:$8 sps:$4 sm:$0xff]  }
  0xc9   :  { %1205 = vmatpush1.bf16.msra.mxu0 %v3900_v52  ;;  %1248 = vmatpush1.bf16.msra.mxu1 %v3903_v53  ;;  %v3966_v52 = vld [vmem:[#allocation6 + $0xd0] ss:$8 sps:$4 sm:$0xff]   ;;  %v3971_v53 = vld [vmem:[#allocation6 + $0xc4] ss:$8 sps:$4 sm:$0xff]  }
  0xca   :  { %1206 = vmatprep.subr.bf16.mxu0 %v3906_v54  ;;  %1249 = vmatprep.subr.bf16.mxu1 %v4331_v0  ;;  %v4002_v54 = vld [vmem:[#allocation6 + $0x110] ss:$8 sps:$4 sm:$0xff]  }
  0xcd   :  { %1207 = vmatpush1.bf16.msra.mxu0 %v3904_v55  ;;  %1250 = vmatpush1.bf16.msra.mxu1 %v3907_v56  ;;  %v4007_v55 = vld [vmem:[#allocation6 + $0x104] ss:$8 sps:$4 sm:$0xff]   ;;  %v3969_v56 = vld [vmem:[#allocation6 + $0xc0] ss:$8 sps:$4 sm:$0xff]  }
  0xce   :  { %1208 = vmatprep.subr.bf16.mxu0 %v3910_v57  ;;  %1251 = vmatprep.subr.bf16.mxu1 %v4331_v0  ;;  %v3974_v57 = vld [vmem:[#allocation6 + $0xb4] ss:$8 sps:$4 sm:$0xff]  }
  0xd1   :  { %1209 = vmatpush1.bf16.msra.mxu0 %v3908_v58  ;;  %1252 = vmatpush1.bf16.msra.mxu1 %v3911_v59  ;;  %v4005_v58 = vld [vmem:[#allocation6 + $0x100] ss:$8 sps:$4 sm:$0xff]   ;;  %v4010_v59 = vld [vmem:[#allocation6 + $0x1f4] ss:$8 sps:$4 sm:$0xff]  }
  0xd2   :  { %1210 = vmatprep.subr.bf16.mxu0 %v3914_v62  ;;  %1253 = vmatprep.subr.bf16.mxu1 %v4331_v0  ;;  %v4008_v62 = vld [vmem:[#allocation6 + $0x1f0] ss:$8 sps:$4 sm:$0xff]  }
  0xd5   :  { %1211 = vmatpush1.bf16.msra.mxu0 %v3912_v63  ;;  %1254 = vmatpush1.bf16.msra.mxu1 %v3915_v1  ;;  %v4013_v63 = vld [vmem:[#allocation6 + $0x1e4] ss:$8 sps:$4 sm:$0xff]   ;;  %v3978_v1 = vld [vmem:[#allocation6 + $0xa0] ss:$8 sps:$4 sm:$0xff]  }
  0xd6   :  { %3444 = vmatprep.subr.msk.bf16.mxu0 %vm650_vm0, %v3916_v2  ;;  %1261 = vmatprep.subr.bf16.mxu1 %v4331_v0  ;;  %v3986_v2 = vld [vmem:[#allocation6 + $0x94] ss:$8 sps:$4 sm:$0xff]  }
  0xd9   :  { %1219 = vmatpush2.bf16.msra.mxu0 %v1145_v3  ;;  %1262 = vmatpush2.bf16.msra.mxu1 %v1151_v4  ;;  %v4011_v3 = vld [vmem:[#allocation6 + $0x1e0] ss:$8 sps:$4 sm:$0xff]   ;;  %v4016_v4 = vld [vmem:[#allocation6 + $0x1d4] ss:$8 sps:$4 sm:$0xff]  }
  0xda   :  { %1220 = vmatprep.subr.bf16.mxu0 %v3922_v5  ;;  %1263 = vmatprep.subr.bf16.mxu1 %v4331_v0  ;;  %v3984_v5 = vld [vmem:[#allocation6 + $0x90] ss:$8 sps:$4 sm:$0xff]  }
  0xdd   :  { %1221 = vmatpush2.bf16.msra.mxu0 %v3920_v6  ;;  %1264 = vmatpush2.bf16.msra.mxu1 %v3923_v7  ;;  %v3992_v6 = vld [vmem:[#allocation6 + $0x84] ss:$8 sps:$4 sm:$0xff]   ;;  %v4014_v7 = vld [vmem:[#allocation6 + $0x1d0] ss:$8 sps:$4 sm:$0xff]  }
  0xde   :  { %1222 = vmatprep.subr.bf16.mxu0 %v3926_v8  ;;  %1265 = vmatprep.subr.bf16.mxu1 %v4331_v0  ;;  %v4019_v8 = vld [vmem:[#allocation6 + $0x1c4] ss:$8 sps:$4 sm:$0xff]  }
  0xe1   :  { %1223 = vmatpush2.bf16.msra.mxu0 %v3924_v9  ;;  %1266 = vmatpush2.bf16.msra.mxu1 %v3927_v10  ;;  %v3990_v9 = vld [vmem:[#allocation6 + $0x80] ss:$8 sps:$4 sm:$0xff]  }
  0xe2   :  { %1224 = vmatprep.subr.bf16.mxu0 %v3930_v11  ;;  %1267 = vmatprep.subr.bf16.mxu1 %v4331_v0  ;;  %v4017_v10 = vld [vmem:[#allocation6 + $0x1c0] ss:$8 sps:$4 sm:$0xff]   ;;  %v3536_v11 = vld [vmem:[%s4803_s10] ss:$0 sm:$0xff] }
  0xe5   :  { %1225 = vmatpush2.bf16.msra.mxu0 %v3928_v12  ;;  %1268 = vmatpush2.bf16.msra.mxu1 %v3931_v13  ;;  %v4022_v12 = vld [vmem:[#allocation6 + $0x1b4] ss:$8 sps:$4 sm:$0xff]   ;;  %v4020_v13 = vld [vmem:[#allocation6 + $0x1b0] ss:$8 sps:$4 sm:$0xff]  }
  0xe6   :  { %1226 = vmatprep.subr.bf16.mxu0 %v3934_v14  ;;  %1269 = vmatprep.subr.bf16.mxu1 %v4331_v0  ;;  %v3537_v14 = vld [vmem:[%s4810_s17 + $0xa] ss:$0 sm:$0xff] }
  0xe9   :  { %1227 = vmatpush2.bf16.msra.mxu0 %v3932_v15  ;;  %1270 = vmatpush2.bf16.msra.mxu1 %v3935_v16 }
  0xea   :  { %1784 = vmatprep.subr.bf16.mxu0 %v3938_v17  ;;  %1827 = vmatprep.subr.bf16.mxu1 %v3977_v29  ;;  %v4029_v29 = vld [vmem:[#allocation6 + $0x180] ss:$8 sps:$4 sm:$0xff]  }
  0xec   :  { %1229 = vmatmul.mubr.bf16.vlgmr.msra.gmra.mxu0 %v4515_v38  ;;  %1272 = vmatmul.mubr.bf16.vlgmr.msra.gmra.mxu1 %v4515_v38  ;;  %v3962_v38 = vld [vmem:[#allocation6 + $0xf4] ss:$8 sps:$4 sm:$0xff]  }
  0xed   :  { %1785 = vmatpush1.bf16.msra.mxu0 %v3936_v18  ;;  %1828 = vmatpush1.bf16.msra.mxu1 %v3975_v31  ;;  %v4025_v18 = vld [vmem:[#allocation6 + $0x1a4] ss:$8 sps:$4 sm:$0xff]   ;;  %v4335_v31 = vmov 0.0  }
  0xee   :  { %1786 = vmatprep.subr.bf16.mxu0 %v3941_v19  ;;  %1829 = vmatprep.subr.bf16.mxu1 %v3983_v33  ;;  %v4551_v15 = vpop.permute.xlu0 %1283  ;;  %v4337_v33 = vmov 3  }
  0xef   :  { %v2202_v16 = vmul.f32 %v3536_v11, %v4551_v15 }
  0xf1   :  { %1787 = vmatpush1.bf16.msra.mxu0 %v3939_v20  ;;  %1830 = vmatpush1.bf16.msra.mxu1 %v3981_v35  ;;  %v2211_v17 = vadd.f32 %v3537_v14, %v2202_v16  ;;  %v4023_v20 = vld [vmem:[#allocation6 + $0x1a0] ss:$8 sps:$4 sm:$0xff]   ;;  %v4339_v35 = vmov 6  }
  0xf2   :  { %1788 = vmatprep.subr.bf16.mxu0 %v3944_v21  ;;  %1831 = vmatprep.subr.bf16.mxu1 %v3989_v37  ;;  %v4554_v19 = vpop.permute.xlu0 %1288 }
  0xf3   :  { %v2213_v21 = vmax.f32 %v2211_v17, 0.0 }
  0xf5   :  { %1789 = vmatpush1.bf16.msra.mxu0 %v3942_v22  ;;  %1832 = vmatpush1.bf16.msra.mxu1 %v3987_v39  ;;  %v2203_v22 = vmul.f32 %v3536_v11, %v4554_v19 }
  0xf6   :  { %1790 = vmatprep.subr.bf16.mxu0 %v3947_v23  ;;  %1833 = vmatprep.subr.bf16.mxu1 %v3995_v40 }
  0xf7   :  { %v2212_v23 = vadd.f32 %v3537_v14, %v2203_v22  ;;  %2218 = vperm.xlu1 %3730, %v2213_v21   ;;  %2233 = vperm.xlu0 %3731, %v2213_v21  }
  0xf9   :  { %1791 = vmatpush1.bf16.msra.mxu0 %v3945_v24  ;;  %1834 = vmatpush1.bf16.msra.mxu1 %v3993_v42  ;;  %v4028_v24 = vld [vmem:[#allocation6 + $0x194] ss:$8 sps:$4 sm:$0xff]  }
  0xfa   :  { %1792 = vmatprep.subr.bf16.mxu0 %v3950_v25  ;;  %1835 = vmatprep.subr.bf16.mxu1 %v3998_v44  ;;  %v4026_v25 = vld [vmem:[#allocation6 + $0x190] ss:$8 sps:$4 sm:$0xff]  }
  0xfd   :  { %1793 = vmatpush1.bf16.msra.mxu0 %v3948_v26  ;;  %1836 = vmatpush1.bf16.msra.mxu1 %v3996_v45  ;;  %v2214_v26 = vmax.f32 %v2212_v23, 0.0 }
  0xfe   :  { %1794 = vmatprep.subr.bf16.mxu0 %v3953_v27  ;;  %1837 = vmatprep.subr.bf16.mxu1 %v4001_v47  ;;  %v4333_v27 = vmov 2  }
  0xff   :  { %2223 = vperm.xlu1 %3730, %v2214_v26   ;;  %3734 = vset.pattern.permute.xlu0 %v4333_v27 }
 0x100   :  { %2253 = vperm.xlu0 %3734, %v2214_v26  }
 0x101   :  { %1795 = vmatpush1.bf16.msra.mxu0 %v3951_v28  ;;  %1838 = vmatpush1.bf16.msra.mxu1 %v3999_v50  ;;  %v4031_v28 = vld [vmem:[#allocation6 + $0x184] ss:$8 sps:$4 sm:$0xff]  }
 0x102   :  { %1796 = vmatprep.subr.bf16.mxu0 %v3956_v30  ;;  %1839 = vmatprep.subr.bf16.mxu1 %v4004_v51  ;;  %v4334_v30 = vmov 4  }
 0x103   :  { %3732 = vset.pattern.permute.xlu1 %v4332_v46  ;;  %v1280_v46 = vld [vmem:[%s4798_s5] sm:$0x1f] }
 0x104   :  { %2237 = vperm.xlu1 %3732, %v2214_v26   ;;  %3736 = vset.pattern.permute.xlu0 %v4334_v30 }
 0x105   :  { %1797 = vmatpush1.bf16.msra.mxu0 %v3954_v32  ;;  %1840 = vmatpush1.bf16.msra.mxu1 %v4002_v54  ;;  %v4336_v32 = vmov 5  }
 0x106   :  { %1798 = vmatprep.subr.bf16.mxu0 %v3959_v34  ;;  %1841 = vmatprep.subr.bf16.mxu1 %v4007_v55  ;;  %v4338_v34 = vmov 7  }
 0x107   :  { %2281 = vperm.xlu0 %3736, %v2213_v21  }
 0x108   :  { %3733 = vset.pattern.permute.xlu1 %v4333_v27 }
 0x109   :  { %1799 = vmatpush1.bf16.msra.mxu0 %v3957_v36  ;;  %1842 = vmatpush1.bf16.msra.mxu1 %v4005_v58  ;;  %v1337_v58 = vld [vmem:[%s4810_s17] sm:$0x1f] }
 0x10a   :  { %1800 = vmatprep.subr.bf16.mxu0 %v3962_v38  ;;  %1843 = vmatprep.subr.bf16.mxu1 %v4010_v59  ;;  %v1292_v38 = vlaneseq }
 0x10b   :  { %2249 = vperm.xlu1 %3733, %v2213_v21   ;;  %3739 = vset.pattern.permute.xlu0 %v4336_v32 }
 0x10c   :  { %2301 = vperm.xlu0 %3739, %v2214_v26  }
 0x10d   :  { %1801 = vmatpush2.bf16.msra.mxu0 %v3960_v41  ;;  %1844 = vmatpush2.bf16.msra.mxu1 %v4008_v62  ;;  %v4562_v41 = vshrl.u32 %v1292_v38, 7 }
 0x10e   :  { %1802 = vmatprep.subr.bf16.mxu0 %v3965_v43  ;;  %1845 = vmatprep.subr.bf16.mxu1 %v4013_v63 }
 0x10f   :  { %3735 = vset.pattern.permute.xlu1 %v4337_v33  ;;  %v4565_v42 = vsub.s32 1, %v4562_v41  ;;  %v4570_v45 = vsub.s32 0, %v4562_v41  ;;  %v4589_v23 = vsub.s32 2, %v4562_v41 }
 0x110   :  { %2265 = vperm.xlu1 %3735, %v2213_v21   ;;  %3741 = vset.pattern.permute.xlu0 %v4338_v34 }
 0x111   :  { %1803 = vmatpush2.bf16.msra.mxu0 %v3963_v48  ;;  %1846 = vmatpush2.bf16.msra.mxu1 %v4011_v3  ;;  %v1299_v47 = vrot.slane %v1280_v46, %v4565_v42  ;;  %v1295_v50 = vrot.slane %v1280_v46, %v4570_v45 }
 0x112   :  { %1804 = vmatprep.subr.bf16.mxu0 %v3968_v49  ;;  %1847 = vmatprep.subr.bf16.mxu1 %v4016_v4 }
 0x113   :  { %2329 = vperm.xlu0 %3741, %v2213_v21   ;;  %v1317_v55 = vmul.f32 %v1295_v50, %v4551_v15  ;;  %v1323_v3 = vmul.f32 %v1299_v47, %v4554_v19 }
 0x114   :  { %2269 = vperm.xlu1 %3735, %v2214_v26  }
 0x115   :  { %1805 = vmatpush2.bf16.msra.mxu0 %v3966_v52  ;;  %1848 = vmatpush2.bf16.msra.mxu1 %v4014_v7 }
 0x116   :  { %1806 = vmatprep.subr.bf16.mxu0 %v3971_v53  ;;  %1849 = vmatprep.subr.bf16.mxu1 %v4019_v8  ;;  %v1318_v53 = vmul.f32 %v1299_v47, %v4551_v15 }
 0x118   :  { %3737 = vset.pattern.permute.xlu1 %v4334_v30 }
 0x119   :  { %1807 = vmatpush2.bf16.msra.mxu0 %v3969_v56  ;;  %1850 = vmatpush2.bf16.msra.mxu1 %v4017_v10 }
 0x11a   :  { %1808 = vmatprep.subr.bf16.mxu0 %v3974_v57  ;;  %1851 = vmatprep.subr.bf16.mxu1 %v4022_v12 }
 0x11b   :  { %2285 = vperm.xlu1 %3737, %v2214_v26  }
 0x11d   :  { %1809 = vmatpush2.bf16.msra.mxu0 %v3972_v60  ;;  %1852 = vmatpush2.bf16.msra.mxu1 %v4020_v13  ;;  %v1322_v60 = vmul.f32 %v1295_v50, %v4554_v19 }
 0x11e   :  { %1810 = vmatprep.subr.bf16.mxu0 %v3980_v61  ;;  %1853 = vmatprep.subr.bf16.mxu1 %v4025_v18 }
 0x11f   :  { %3738 = vset.pattern.permute.xlu1 %v4336_v32 }
 0x120   :  { %2297 = vperm.xlu1 %3738, %v2213_v21  }
 0x121   :  { %1811 = vmatpush2.bf16.msra.mxu0 %v3978_v1  ;;  %1854 = vmatpush2.bf16.msra.mxu1 %v4023_v20  ;;  %v1346_v1 = vrot.slane %v1337_v58, %v4565_v42 }
 0x122   :  { %1812 = vmatprep.subr.bf16.mxu0 %v3986_v2  ;;  %1855 = vmatprep.subr.bf16.mxu1 %v4028_v24  ;;  %v4592_v24 = vsub.s32 4, %v4562_v41 }
 0x124   :  { %3740 = vset.pattern.permute.xlu1 %v4339_v35  ;;  %v1311_v27 = vrot.slane %v1280_v46, %v4592_v24 }
 0x125   :  { %1813 = vmatpush2.bf16.msra.mxu0 %v3984_v5  ;;  %1856 = vmatpush2.bf16.msra.mxu1 %v4026_v25  ;;  %v1342_v5 = vrot.slane %v1337_v58, %v4570_v45  ;;  %v4595_v25 = vsub.s32 3, %v4562_v41 }
 0x126   :  { %1814 = vmatprep.subr.bf16.mxu0 %v3992_v6  ;;  %1857 = vmatprep.subr.bf16.mxu1 %v4031_v28  ;;  %v1321_v30 = vmul.f32 %v1311_v27, %v4551_v15 }
 0x127   :  { %2313 = vperm.xlu1 %3740, %v2213_v21   ;;  %v1307_v28 = vrot.slane %v1280_v46, %v4595_v25 }
 0x129   :  { %1815 = vmatpush2.bf16.msra.mxu0 %v3990_v9  ;;  %1858 = vmatpush2.bf16.msra.mxu1 %v4029_v29 }
 0x12a   :  { %3692 = vmatprep.subr.bf16.mxu1 %v4335_v31 }
 0x12b   :  { %2317 = vperm.xlu1 %3740, %v2214_v26  }
 0x12f   :  { %3742 = vset.pattern.permute.xlu1 %v4338_v34 }
 0x130   :  { %2333 = vperm.xlu1 %3742, %v2214_v26   ;;  %v1303_v26 = vrot.slane %v1280_v46, %v4589_v23  ;;  %v1358_v46 = vrot.slane %v1337_v58, %v4592_v24 }
 0x132   :  { %v1319_v29 = vmul.f32 %v1303_v26, %v4551_v15 }
 0x144   :  { %v700_v36 = vpop.f32.mrf.mxu0  ;;  %v743_v37 = vpop.f32.mrf.mxu1 }
 0x146   :  { %v702_v39 = vpop.f32.mrf.mxu0  ;;  %v4559_v40 = vpop.f32.mrf.mxu1 }
 0x148   :  { %v704_v43 = vpop.f32.mrf.mxu0  ;;  %v4567_v44 = vpop.f32.mrf.mxu1 }
 0x14a   :  { %v706_v48 = vpop.f32.mrf.mxu0  ;;  %v4576_v49 = vpop.f32.mrf.mxu1 }
 0x178   :  { %v786_v51 = vpop.f32.mrf.mxu0  ;;  %v1187_v52 = vpop.f32.mrf.mxu1 }
 0x179   :  { %v1188_v54 = vadd.f32 %v1187_v52, %v700_v36  ;;  %v1320_v36 = vmul.f32 %v1307_v28, %v4551_v15  ;;  %v1354_v15 = vrot.slane %v1337_v58, %v4595_v25 }
 0x17a   :  { %v788_v56 = vpop.f32.mrf.mxu0  ;;  %v1189_v57 = vpop.f32.mrf.mxu1 }
 0x17b   :  { %v1190_v59 = vadd.f32 %v1189_v57, %v702_v39  ;;  %v1327_v4 = vadd.f32 %v1317_v55, %v1188_v54 }
 0x17c   :  { %v789_v61 = vpop.f32.mrf.mxu0  ;;  %v1191_v62 = vpop.f32.mrf.mxu1 }
 0x17d   :  { %v1328_v63 = vadd.f32 %v1318_v53, %v1190_v59  ;;  %v1192_v2 = vadd.f32 %v1191_v62, %v704_v43  ;;  %v1364_v13 = vadd.f32 %v1342_v5, %v1327_v4  ;;  %v1326_v59 = vmul.f32 %v1311_v27, %v4554_v19  ;;  %v4033_v27 = vld [vmem:[%s4801_s8] sm:$0xff]  }
 0x17e   :  { %v791_v6 = vpop.f32.mrf.mxu0  ;;  %v1193_v7 = vpop.f32.mrf.mxu1  ;;  %v1325_v4 = vmul.f32 %v1307_v28, %v4554_v19 }
 0x17f   :  { %v1332_v8 = vadd.f32 %v1322_v60, %v1192_v2  ;;  %v1194_v9 = vadd.f32 %v1193_v7, %v706_v48  ;;  %v1365_v10 = vadd.f32 %v1346_v1, %v1328_v63  ;;  %v1374_v20 = vmax.f32 %v1364_v13, 0.0 }
 0x180   :  { %v1350_v48 = vrot.slane %v1337_v58, %v4589_v23 }
 0x181   :  { %v1369_v11 = vadd.f32 %v1342_v5, %v1332_v8  ;;  %v1333_v12 = vadd.f32 %v1323_v3, %v1194_v9  ;;  %v1375_v17 = vmax.f32 %v1365_v10, 0.0 }
 0x183   :  { %v1370_v14 = vadd.f32 %v1346_v1, %v1333_v12  ;;  %v1379_v16 = vmax.f32 %v1369_v11, 0.0 }
 0x185   :  { %v1380_v18 = vmax.f32 %v1370_v14, 0.0  ;;  %v1384_v22 = vpack.c.bf16 %v1379_v16, %v1374_v20 }
 0x187   :  { %v1385_v21 = vpack.c.bf16 %v1380_v18, %v1375_v17  ;;  %v4032_v18 = vld [vmem:[%s4801_s8 + $0x8] sm:$0xff]  }
 0x189   :  { %1816 = vmatprep.mubr.bf16.mxu0 %v1385_v21 }
 0x18a   :  { %1817 = vmatmul.mubr.bf16.vlgmr.msra.gmra.mxu0 %v1384_v22  ;;  %v2234_v22 = vpop.permute.xlu0 %2233 }
 0x1ac   :  { %v1230_v32 = vpop.f32.mrf.mxu0  ;;  %v1273_v33 = vpop.f32.mrf.mxu1 }
 0x1ad   :  { %v1231_v34 = vadd.f32 %v1230_v32, %v743_v37  ;;  %v1274_v35 = vadd.f32 %v1273_v33, %v786_v51  ;;  %v1324_v37 = vmul.f32 %v1303_v26, %v4554_v19  ;;  %v2219_v51 = vpop.permute.xlu1 %2218  ;;  %v2254_v33 = vpop.permute.xlu0 %2253 }
 0x1ae   :  { %v1232_v39 = vpop.f32.mrf.mxu0  ;;  %v1275_v43 = vpop.f32.mrf.mxu1 }
 0x1af   :  { %v1329_v47 = vadd.f32 %v1319_v29, %v1231_v34  ;;  %v1331_v50 = vadd.f32 %v1321_v30, %v1274_v35  ;;  %v1233_v52 = vadd.f32 %v1232_v39, %v4559_v40 }
 0x1b0   :  { %v1234_v53 = vpop.f32.mrf.mxu0  ;;  %v1276_v54 = vpop.f32.mrf.mxu1 }
 0x1b1   :  { %v1330_v55 = vadd.f32 %v1320_v36, %v1233_v52  ;;  %v1235_v56 = vadd.f32 %v1234_v53, %v4567_v44  ;;  %v1277_v57 = vadd.f32 %v1276_v54, %v789_v61  ;;  %v1366_v63 = vadd.f32 %v1350_v48, %v1329_v47  ;;  %v2224_v44 = vpop.permute.xlu1 %2223  ;;  %v2282_v52 = vpop.permute.xlu0 %2281 }
 0x1b2   :  { %v1236_v60 = vpop.f32.mrf.mxu0  ;;  %v1278_v62 = vpop.f32.mrf.mxu1  ;;  %v1368_v40 = vadd.f32 %v1358_v46, %v1331_v50  ;;  %v2306_v53 = vsub.s32 5, %v4562_v41 }
 0x1b3   :  { %v1334_v1 = vadd.f32 %v1324_v37, %v1235_v56  ;;  %v1336_v2 = vadd.f32 %v1326_v59, %v1277_v57  ;;  %v1237_v3 = vadd.f32 %v1236_v60, %v4576_v49  ;;  %v1367_v6 = vadd.f32 %v1354_v15, %v1330_v55  ;;  %v2215_v49 = vld [vmem:[%s4804_s11] sm:$0xff] }
 0x1b4   :  { %v1376_v9 = vmax.f32 %v1366_v63, 0.0  ;;  %v1378_v61 = vmax.f32 %v1368_v40, 0.0  ;;  %v2229_v20 = vrot.slane %v2215_v49, %v4570_v45  ;;  %v2243_v21 = vrot.slane %v2215_v49, %v4565_v42  ;;  %v4036_v40 = vld [vmem:[%s4800_s7 + $0x70] sm:$0xff]  }
 0x1b5   :  { %v1371_v5 = vadd.f32 %v1350_v48, %v1334_v1  ;;  %v1373_v7 = vadd.f32 %v1358_v46, %v1336_v2  ;;  %v1335_v8 = vadd.f32 %v1325_v4, %v1237_v3  ;;  %v2238_v13 = vpop.permute.xlu1 %2237  ;;  %v1377_v14 = vmax.f32 %v1367_v6, 0.0  ;;  %v2302_v59 = vpop.permute.xlu0 %2301  ;;  %v4035_v1 = vld [vmem:[%s4800_s7 + $0x38] sm:$0xff]  }
 0x1b6   :  { %v2230_v28 = vmul.f32 %v2229_v20, %v2219_v51  ;;  %v2259_v29 = vrot.slane %v2215_v49, %v4589_v23  ;;  %v2244_v30 = vmul.f32 %v2243_v21, %v2234_v22  ;;  %v2275_v35 = vrot.slane %v2215_v49, %v4595_v25 }
 0x1b7   :  { %v1381_v58 = vmax.f32 %v1371_v5, 0.0  ;;  %v1383_v10 = vmax.f32 %v1373_v7, 0.0  ;;  %v1372_v11 = vadd.f32 %v1354_v15, %v1335_v8  ;;  %v2231_v39 = vmul.f32 %v2229_v20, %v2224_v44  ;;  %v4037_v44 = vld [vmem:[%s4800_s7 + $0x30] sm:$0xff]   ;;  %v4038_v8 = vld [vmem:[%s4800_s7 + $0x68] sm:$0xff]  }
 0x1b8   :  { %v2246_v36 = vadd.f32 %v2244_v30, %v2230_v28  ;;  %v2245_v43 = vmul.f32 %v2243_v21, %v2238_v13  ;;  %v2291_v48 = vrot.slane %v2215_v49, %v4592_v24  ;;  %v2261_v25 = vmul.f32 %v2259_v29, %v2254_v33  ;;  %v4034_v24 = vld [vmem:[%s4800_s7 + $0x78] sm:$0xff]   ;;  %v3538_v20 = vld [vmem:[%s4810_s17 + $0xb] ss:$0 sm:$0xff] }
 0x1b9   :  { %v1386_v12 = vpack.c.bf16 %v1381_v58, %v1376_v9  ;;  %v2054_v16 = vpack.c.bf16 %v1383_v10, %v1378_v61  ;;  %v1382_v17 = vmax.f32 %v1372_v11, 0.0  ;;  %v2250_v26 = vpop.permute.xlu1 %2249  ;;  %v2307_v51 = vrot.slane %v2215_v49, %v2306_v53  ;;  %3642 = vmatprep.subr.bf16.mxu0 %v4034_v24  ;;  %v2330_v7 = vpop.permute.xlu0 %2329  ;;  %v4042_v21 = vld [vmem:[%s4800_s7 + $0x58] sm:$0xff]  }
 0x1ba   :  { %v2260_v34 = vmul.f32 %v2259_v29, %v2250_v26  ;;  %v2247_v46 = vadd.f32 %v2245_v43, %v2231_v39  ;;  %v2292_v56 = vmul.f32 %v2291_v48, %v2282_v52  ;;  %v2322_v57 = vsub.s32 6, %v4562_v41  ;;  %3643 = vmatpush3.bf16.msra.mxu0 %v4035_v1  ;;  %v4043_v29 = vld [vmem:[%s4800_s7 + $0x18] sm:$0xff]   ;;  %v4045_v39 = vld [vmem:[%s4800_s7 + $0x10] sm:$0xff]   ;;  %v4046_v43 = vld [vmem:[%s4800_s7 + $0x48] sm:$0xff]  }
 0x1bb   :  { %v1387_v19 = vpack.c.bf16 %v1382_v17, %v1377_v14  ;;  %v2338_v60 = vsub.s32 7, %v4562_v41  ;;  %3644 = vmatprep.subr.bf16.mxu0 %v4036_v40  ;;  %v2309_v61 = vmul.f32 %v2307_v51, %v2302_v59  ;;  %v4040_v14 = vld [vmem:[%s4800_s7 + $0x60] sm:$0xff]  }
 0x1bc   :  { %v2262_v50 = vadd.f32 %v2260_v34, %v2246_v36  ;;  %v2263_v15 = vadd.f32 %v2261_v25, %v2247_v46  ;;  %v2323_v5 = vrot.slane %v2215_v49, %v2322_v57  ;;  %v4044_v36 = vld [vmem:[%s4800_s7 + $0x50] sm:$0xff]   ;;  %v4051_v52 = vld [vmem:[%s4802_s9] sm:$0xff]  }
 0x1bd   :  { %1859 = vmatprep.mubr.bf16.mxu1 %v1387_v19  ;;  %v2266_v32 = vpop.permute.xlu1 %2265  ;;  %v2339_v41 = vrot.slane %v2215_v49, %v2338_v60  ;;  %v1452_v25 = vld [vmem:[%s4810_s17 + $0x5] sm:$0x3] }
 0x1be   :  { %1860 = vmatmul.mubr.bf16.vlgmr.msra.gmra.mxu1 %v1386_v12  ;;  %v2276_v23 = vmul.f32 %v2275_v35, %v2266_v32  ;;  %3645 = vmatpush3.bf16.msra.mxu0 %v4037_v44  ;;  %v4039_v12 = vld [vmem:[%s4800_s7 + $0x28] sm:$0xff]  }
 0x1bf   :  { %3693 = vmatpush3.bf16.msra.mxu1 %v4032_v18  ;;  %3696 = vmatprep.mubr.msk.bf16.mxu1 %vm4340_vm2, %v4335_v31  ;;  %v2340_v11 = vmul.f32 %v2339_v41, %v2330_v7  ;;  %v4041_v18 = vld [vmem:[%s4800_s7 + $0x20] sm:$0xff]  }
 0x1c0   :  { %3694 = vmatprep.subr.bf16.mxu1 %v4335_v31  ;;  %v2278_v55 = vadd.f32 %v2276_v23, %v2262_v50  ;;  %3646 = vmatprep.subr.bf16.mxu0 %v4038_v8  ;;  %v4048_v23 = vld [vmem:[%s4800_s7 + $0x40] sm:$0xff]   ;;  %v4050_v50 = vld [vmem:[%s4802_s9 + $0x8] sm:$0xff]  }
 0x1c1   :  { %v2270_v47 = vpop.permute.xlu1 %2269 }
 0x1c2   :  { %v2277_v37 = vmul.f32 %v2275_v35, %v2270_v47  ;;  %v2294_v63 = vadd.f32 %v2292_v56, %v2278_v55  ;;  %3647 = vmatpush3.bf16.msra.mxu0 %v4039_v12  ;;  %v4047_v47 = vld [vmem:[%s4800_s7 + $0x8] sm:$0xff]   ;;  %v1461_v55 = vrot.slane %v1452_v25, %v4565_v42  ;;  %v1457_v56 = vrot.slane %v1452_v25, %v4570_v45 }
 0x1c3   :  { %3695 = vmatpush3.bf16.msra.mxu1 %v4033_v27  ;;  %3648 = vmatprep.subr.bf16.mxu0 %v4040_v14 }
 0x1c4   :  { %3700 = vmatprep.subr.bf16.mxu1 %v4335_v31  ;;  %v2279_v4 = vadd.f32 %v2277_v37, %v2263_v15 }
 0x1c5   :  { %v2286_v54 = vpop.permute.xlu1 %2285 }
 0x1c6   :  { %3697 = vmatmul.mubr.msk.bf16.vlgmr.msra.gmra.mxu1 %vm2078_vm3, %v2054_v16  ;;  %v2293_v2 = vmul.f32 %v2291_v48, %v2286_v54  ;;  %3649 = vmatpush3.bf16.msra.mxu0 %v4041_v18  ;;  %v4049_v48 = vld [vmem:[%s4800_s7] sm:$0xff]  }
 0x1c7   :  { %3704 = vmatprep.mubr.msk.bf16.mxu1 %vm4340_vm2, %v4335_v31  ;;  %3650 = vmatprep.subr.bf16.mxu0 %v4042_v21  ;;  %v4056_v18 = vld [vmem:[%s4806_s13 + $0x4] ss:$8 sps:$4 sm:$0xff]  }
 0x1c8   :  { %v2295_v58 = vadd.f32 %v2293_v2, %v2279_v4  ;;  %3701 = vmatpush3.bf16.msra.mxu1 %v4050_v50  ;;  %v3528_v4 = vld [vmem:[%s4810_s17 + $0x8] ss:$0 sm:$0xff]  ;;  %v4059_v21 = vld [vmem:[#allocation7 + $0x74] ss:$8 sps:$4 sm:$0xff]  }
 0x1c9   :  { %v2298_v62 = vpop.permute.xlu1 %2297  ;;  %3702 = vmatprep.subr.bf16.mxu1 %v4335_v31 }
 0x1ca   :  { %v2308_v3 = vmul.f32 %v2307_v51, %v2298_v62  ;;  %v2311_v17 = vadd.f32 %v2309_v61, %v2295_v58  ;;  %3651 = vmatpush3.bf16.msra.mxu0 %v4043_v29  ;;  %v4089_v29 = vld [vmem:[#allocation9 + $0x54] ss:$8 sps:$4 sm:$0xff]  }
 0x1cb   :  { %3652 = vmatprep.subr.bf16.mxu0 %v4044_v36  ;;  %v3532_v36 = vld [vmem:[%s4810_s17 + $0x9] ss:$0 sm:$0xff] }
 0x1cc   :  { %v2310_v6 = vadd.f32 %v2308_v3, %v2294_v63  ;;  %3703 = vmatpush3.bf16.msra.mxu1 %v4051_v52 }
 0x1cd   :  { %v2314_v9 = vpop.permute.xlu1 %2313 }
 0x1ce   :  { %v2324_v10 = vmul.f32 %v2323_v5, %v2314_v9  ;;  %3653 = vmatpush3.bf16.msra.mxu0 %v4045_v39 }
 0x1cf   :  { %3654 = vmatprep.subr.bf16.mxu0 %v4046_v43 }
 0x1d0   :  { %v2326_v13 = vadd.f32 %v2324_v10, %v2310_v6 }
 0x1d1   :  { %v2318_v16 = vpop.permute.xlu1 %2317 }
 0x1d2   :  { %v2325_v49 = vmul.f32 %v2323_v5, %v2318_v16  ;;  %v2342_v19 = vadd.f32 %v2340_v11, %v2326_v13  ;;  %3655 = vmatpush3.bf16.msra.mxu0 %v4047_v47  ;;  %v2386_v16 = vld [vmem:[%s4806_s13 + $0x10] sm:$0xff] }
 0x1d3   :  { %3656 = vmatprep.subr.bf16.mxu0 %v4048_v23 }
 0x1d4   :  { %v2327_v22 = vadd.f32 %v2325_v49, %v2311_v17  ;;  %v2351_v28 = vadd.f32 %v3538_v20, %v2342_v19  ;;  %v3542_v17 = vcombine.high %v2386_v16, %v2386_v16  ;;  %v3541_v49 = vcombine.low %v2386_v16, %v2386_v16  ;;  %v4099_v16 = vld [vmem:[#allocation9 + $0x10] ss:$8 sps:$4 sm:$0xff]  }
 0x1d5   :  { %v2334_v26 = vpop.permute.xlu1 %2333 }
 0x1d6   :  { %v2341_v27 = vmul.f32 %v2339_v41, %v2334_v26  ;;  %v2353_v33 = vmax.f32 %v2351_v28, 0.0  ;;  %3657 = vmatpush3.bf16.msra.mxu0 %v4049_v48  ;;  %3543 = vmatprep.subr.msk.bf16.mxu1 %vm2406_vm4, %v3542_v17  ;;  %v2408_v19 = vsel %vm2406_vm4, %v3541_v49, 0  ;;  %v4083_v26 = vld [vmem:[#allocation9 + $0x74] ss:$8 sps:$4 sm:$0xff]   ;;  %v4084_v28 = vld [vmem:[#allocation9 + $0x60] ss:$8 sps:$4 sm:$0xff]  }
 0x1d7   :  { %2805 = vmatprep.subr.bf16.mxu0 %v4083_v26  ;;  %v4101_v17 = vld [vmem:[#allocation9 + $0x14] ss:$8 sps:$4 sm:$0xff]   ;;  %v4104_v49 = vld [vmem:[#allocation9 + $0x4] ss:$8 sps:$4 sm:$0xff]  }
 0x1d8   :  { %v2343_v30 = vadd.f32 %v2341_v27, %v2327_v22  ;;  %v4081_v22 = vld [vmem:[#allocation9 + $0x70] ss:$8 sps:$4 sm:$0xff]   ;;  %v4086_v27 = vld [vmem:[#allocation9 + $0x64] ss:$8 sps:$4 sm:$0xff]   ;;  %v4113_v26 = vld [vmem:[#allocation9 + $0xd4] ss:$8 sps:$4 sm:$0xff]  }
 0x1da   :  { %v2352_v32 = vadd.f32 %v3538_v20, %v2343_v30  ;;  %v4054_v20 = vld [vmem:[%s4806_s13] ss:$8 sps:$4 sm:$0xff]  }
 0x1db   :  { %v4087_v30 = vld [vmem:[#allocation9 + $0x50] ss:$8 sps:$4 sm:$0xff]  }
 0x1dc   :  { %v2354_v34 = vmax.f32 %v2352_v32, 0.0  ;;  %v4092_v32 = vld [vmem:[#allocation9 + $0x44] ss:$8 sps:$4 sm:$0xff]  }
 0x1de   :  { %v3743_v35 = vpack.i.bf16 %v2354_v34, %v2353_v33  ;;  %v4090_v33 = vld [vmem:[#allocation9 + $0x40] ss:$8 sps:$4 sm:$0xff]   ;;  %v4095_v34 = vld [vmem:[#allocation9 + $0x34] ss:$8 sps:$4 sm:$0xff]  }
 0x1e0   :  { %3744 = vrot.lane.b32.xlu1 %v3743_v35, %s4341_s25  ;;  %v4093_v35 = vld [vmem:[#allocation9 + $0x30] ss:$8 sps:$4 sm:$0xff]  }
 0x24a   :  { %v1818_v46 = vpop.f32.mrf.mxu0 }
 0x24b   :  { %v1819_v59 = vadd.f32 %v1818_v46, %v1457_v56 }
 0x24c   :  { %v1820_v53 = vpop.f32.mrf.mxu0 }
 0x24d   :  { %v1821_v31 = vadd.f32 %v1820_v53, %v1461_v55 }
 0x24e   :  { %v1822_v54 = vpop.f32.mrf.mxu0 }
 0x24f   :  { %v1823_v57 = vadd.f32 %v1822_v54, %v1457_v56 }
 0x250   :  { %v1824_v51 = vpop.f32.mrf.mxu0 }
 0x251   :  { %v1825_v62 = vadd.f32 %v1824_v51, %v1461_v55 }
 0x252   :  { %v3745_v23 = vpop.permute.xlu1 %3744 }
 0x253   :  { %v3747_v53 = vunpack.i.h.bf16 %v3745_v23  ;;  %v3746_v25 = vunpack.i.l.bf16 %v3745_v23  ;;  %v4131_v23 = vld [vmem:[#allocation10 + $0x74] ss:$8 sps:$4 sm:$0xff]  }
 0x27e   :  { %v1861_v37 = vpop.f32.mrf.mxu1 }
 0x27f   :  { %v1862_v1 = vadd.f32 %v1861_v37, %v1819_v59  ;;  %v4057_v37 = vld [vmem:[#allocation7 + $0x70] ss:$8 sps:$4 sm:$0xff]  }
 0x280   :  { %v1863_v15 = vpop.f32.mrf.mxu1 }
 0x281   :  { %v1864_v63 = vadd.f32 %v1863_v15, %v1821_v31  ;;  %v1870_v6 = vmax.f32 %v1862_v1, 0.0  ;;  %v4062_v15 = vld [vmem:[#allocation7 + $0x64] ss:$8 sps:$4 sm:$0xff]   ;;  %v4060_v31 = vld [vmem:[#allocation7 + $0x60] ss:$8 sps:$4 sm:$0xff]  }
 0x282   :  { %v1865_v60 = vpop.f32.mrf.mxu1  ;;  %v4071_v1 = vld [vmem:[#allocation7 + $0x34] ss:$8 sps:$4 sm:$0xff]  }
 0x283   :  { %v1866_v24 = vadd.f32 %v1865_v60, %v1823_v57  ;;  %v1871_v41 = vmax.f32 %v1864_v63, 0.0  ;;  %v4065_v57 = vld [vmem:[#allocation7 + $0x54] ss:$8 sps:$4 sm:$0xff]   ;;  %v4063_v60 = vld [vmem:[#allocation7 + $0x50] ss:$8 sps:$4 sm:$0xff]  }
 0x284   :  { %v1867_v40 = vpop.f32.mrf.mxu1 }
 0x285   :  { %v1868_v2 = vadd.f32 %v1867_v40, %v1825_v62  ;;  %v1872_v3 = vmax.f32 %v1866_v24, 0.0  ;;  %v4068_v62 = vld [vmem:[#allocation7 + $0x44] ss:$8 sps:$4 sm:$0xff]   ;;  %v4066_v24 = vld [vmem:[#allocation7 + $0x40] ss:$8 sps:$4 sm:$0xff]  }
 0x286   :  { %v2116_v5 = vpop.f32.mrf.mxu1 }
 0x287   :  { %v1873_v44 = vmax.f32 %v1868_v2, 0.0  ;;  %v2117_v9 = vadd.f32 %v3528_v4, %v2116_v5  ;;  %v1874_v58 = vpack.c.bf16 %v1872_v3, %v1870_v6  ;;  %v4069_v2 = vld [vmem:[#allocation7 + $0x30] ss:$8 sps:$4 sm:$0xff]   ;;  %v4074_v3 = vld [vmem:[#allocation7 + $0x24] ss:$8 sps:$4 sm:$0xff]  }
 0x288   :  { %v3698_v7 = vpop.f32.mrf.mxu1  ;;  %v3511_v6 = vld [vmem:[%s4810_s17 + $0x7] ss:$0 sm:$0xff] }
 0x289   :  { %v1875_v8 = vpack.c.bf16 %v1873_v44, %v1871_v41  ;;  %v2123_v12 = vmax.f32 %v2117_v9, 0.0  ;;  %v4077_v41 = vld [vmem:[#allocation7 + $0x14] ss:$8 sps:$4 sm:$0xff]   ;;  %v4075_v7 = vld [vmem:[#allocation7 + $0x10] ss:$8 sps:$4 sm:$0xff]  }
 0x28a   :  { %v2119_v61 = vpop.f32.mrf.mxu1  ;;  %v4080_v9 = vld [vmem:[#allocation7 + $0x4] ss:$8 sps:$4 sm:$0xff]  }
 0x28b   :  { %v2120_v10 = vadd.f32 %v3528_v4, %v2119_v61  ;;  %2043 = vmatprep.mubr.bf16.mxu0 %v1875_v8  ;;  %v4078_v61 = vld [vmem:[#allocation7] ss:$8 sps:$4 sm:$0xff]  }
 0x28c   :  { %2044 = vmatmul.mubr.bf16.vlgmr.msra.gmra.mxu0 %v1874_v58  ;;  %v3699_v11 = vpop.f32.mrf.mxu1 }
 0x28d   :  { %v2124_v13 = vmax.f32 %v2120_v10, 0.0  ;;  %2806 = vmatpush1.bf16.msra.mxu0 %v4081_v22  ;;  %v4108_v22 = vld [vmem:[#allocation9 + $0xe0] ss:$8 sps:$4 sm:$0xff]  }
 0x28e   :  { %2807 = vmatprep.subr.bf16.mxu0 %v4086_v27  ;;  %v4111_v27 = vld [vmem:[#allocation9 + $0xd0] ss:$8 sps:$4 sm:$0xff]  }
 0x28f   :  { %v2125_v14 = vpack.c.bf16 %v2124_v13, %v2123_v12  ;;  %v4096_v13 = vld [vmem:[#allocation9 + $0x20] ss:$8 sps:$4 sm:$0xff]  }
 0x291   :  { %3705 = vmatmul.mubr.msk.bf16.vlgmr.msra.gmra.mxu1 %vm2078_vm3, %v2125_v14  ;;  %2808 = vmatpush1.bf16.msra.mxu0 %v4084_v28  ;;  %v4098_v14 = vld [vmem:[#allocation9 + $0x24] ss:$8 sps:$4 sm:$0xff]  }
 0x292   :  { %2445 = vmatprep.mubr.bf16.mxu1 %v4331_v0  ;;  %2426 = vmatpush1.bf16.msra.mxu1 %v2408_v19  ;;  %v4102_v19 = vld [vmem:[#allocation9] ss:$8 sps:$4 sm:$0xff]   ;;  %v4116_v28 = vld [vmem:[#allocation9 + $0xc4] ss:$8 sps:$4 sm:$0xff]  }
 0x293   :  { %2427 = vmatprep.subr.bf16.mxu1 %v4056_v18  ;;  %2809 = vmatprep.subr.bf16.mxu0 %v4089_v29  ;;  %v4107_v18 = vld [vmem:[#allocation9 + $0xf4] ss:$8 sps:$4 sm:$0xff]   ;;  %v4114_v29 = vld [vmem:[#allocation9 + $0xc0] ss:$8 sps:$4 sm:$0xff]  }
 0x295   :  { %2810 = vmatpush1.bf16.msra.mxu0 %v4087_v30  ;;  %v4119_v30 = vld [vmem:[#allocation9 + $0xb4] ss:$8 sps:$4 sm:$0xff]  }
 0x296   :  { %2428 = vmatpush1.bf16.msra.mxu1 %v4054_v20  ;;  %2811 = vmatprep.subr.bf16.mxu0 %v4092_v32  ;;  %v4105_v20 = vld [vmem:[#allocation9 + $0xf0] ss:$8 sps:$4 sm:$0xff]  }
 0x297   :  { %2536 = vmatprep.subr.bf16.mxu1 %v4059_v21  ;;  %v4110_v21 = vld [vmem:[#allocation9 + $0xe4] ss:$8 sps:$4 sm:$0xff]   ;;  %v4117_v32 = vld [vmem:[#allocation9 + $0xb0] ss:$8 sps:$4 sm:$0xff]  }
 0x299   :  { %2812 = vmatpush1.bf16.msra.mxu0 %v4090_v33  ;;  %v4122_v33 = vld [vmem:[#allocation9 + $0xa4] ss:$8 sps:$4 sm:$0xff]  }
 0x29a   :  { %2813 = vmatprep.subr.bf16.mxu0 %v4095_v34  ;;  %v4120_v34 = vld [vmem:[#allocation9 + $0xa0] ss:$8 sps:$4 sm:$0xff]  }
 0x29d   :  { %2814 = vmatpush1.bf16.msra.mxu0 %v4093_v35  ;;  %v4125_v35 = vld [vmem:[#allocation9 + $0x94] ss:$8 sps:$4 sm:$0xff]  }
 0x29e   :  { %2815 = vmatprep.subr.bf16.mxu0 %v4098_v14 }
 0x2a1   :  { %2816 = vmatpush1.bf16.msra.mxu0 %v4096_v13 }
 0x2a2   :  { %2817 = vmatprep.subr.bf16.mxu0 %v4101_v17 }
 0x2a5   :  { %2818 = vmatpush1.bf16.msra.mxu0 %v4099_v16 }
 0x2a6   :  { %2819 = vmatprep.subr.bf16.mxu0 %v4104_v49 }
 0x2a9   :  { %2820 = vmatpush1.bf16.msra.mxu0 %v4102_v19 }
 0x2aa   :  { %2821 = vmatprep.subr.bf16.mxu0 %v4107_v18 }
 0x2ad   :  { %2822 = vmatpush2.bf16.msra.mxu0 %v4105_v20 }
 0x2ae   :  { %2823 = vmatprep.subr.bf16.mxu0 %v4110_v21 }
 0x2b1   :  { %2824 = vmatpush2.bf16.msra.mxu0 %v4108_v22 }
 0x2b2   :  { %2825 = vmatprep.subr.bf16.mxu0 %v4113_v26 }
 0x2b5   :  { %2826 = vmatpush2.bf16.msra.mxu0 %v4111_v27 }
 0x2b6   :  { %2827 = vmatprep.subr.bf16.mxu0 %v4116_v28  ;;  %v4170_v28 = vld [vmem:[#allocation10 + $0xa4] ss:$8 sps:$4 sm:$0xff]  }
 0x2b9   :  { %2828 = vmatpush2.bf16.msra.mxu0 %v4114_v29  ;;  %v4168_v29 = vld [vmem:[#allocation10 + $0xa0] ss:$8 sps:$4 sm:$0xff]  }
 0x2ba   :  { %2829 = vmatprep.subr.bf16.mxu0 %v4119_v30  ;;  %v4173_v30 = vld [vmem:[#allocation10 + $0x94] ss:$8 sps:$4 sm:$0xff]  }
 0x2bd   :  { %2830 = vmatpush2.bf16.msra.mxu0 %v4117_v32  ;;  %v4171_v32 = vld [vmem:[#allocation10 + $0x90] ss:$8 sps:$4 sm:$0xff]  }
 0x2be   :  { %2831 = vmatprep.subr.bf16.mxu0 %v4122_v33  ;;  %v4176_v33 = vld [vmem:[#allocation10 + $0x84] ss:$8 sps:$4 sm:$0xff]  }
 0x2c1   :  { %2832 = vmatpush2.bf16.msra.mxu0 %v4120_v34  ;;  %v4174_v34 = vld [vmem:[#allocation10 + $0x80] ss:$8 sps:$4 sm:$0xff]  }
 0x2c2   :  { %2833 = vmatprep.subr.bf16.mxu0 %v4125_v35  ;;  %v4177_v35 = vld [vmem:[%s4809_s16 + $0x78] sm:$0xff]  }
 0x34c   :  { %v3658_v59 = vpop.f32.mrf.mxu0 }
 0x34e   :  { %v3659_v63 = vpop.f32.mrf.mxu0 }
 0x34f   :  { %v3660_v44 = vadd.f32 %v3659_v63, %v3658_v59  ;;  %v4155_v59 = vld [vmem:[#allocation10 + $0xf4] ss:$8 sps:$4 sm:$0xff]   ;;  %v4156_v63 = vld [vmem:[#allocation10 + $0xe0] ss:$8 sps:$4 sm:$0xff]  }
 0x350   :  { %v3661_v40 = vpop.f32.mrf.mxu0 }
 0x351   :  { %v2186_v39 = vpop.f32.mrf.mxu1  ;;  %v2046_v58 = vadd.f32 %v3660_v44, %v3511_v6 }
 0x352   :  { %v2187_v43 = vadd.f32 %v3532_v36, %v2186_v39  ;;  %v3662_v4 = vpop.f32.mrf.mxu0  ;;  %v4128_v39 = vld [vmem:[#allocation9 + $0x84] ss:$8 sps:$4 sm:$0xff]  }
 0x353   :  { %v3706_v47 = vpop.f32.mrf.mxu1  ;;  %v3663_v5 = vadd.f32 %v3662_v4, %v3661_v40  ;;  %v2052_v11 = vmax.f32 %v2046_v58, 0.0  ;;  %v4164_v40 = vld [vmem:[#allocation10 + $0xc4] ss:$8 sps:$4 sm:$0xff]   ;;  %v4165_v4 = vld [vmem:[#allocation10 + $0xb0] ss:$8 sps:$4 sm:$0xff]  }
 0x354   :  { %v2193_v50 = vmax.f32 %v2187_v43, 0.0  ;;  %v4126_v43 = vld [vmem:[#allocation9 + $0x80] ss:$8 sps:$4 sm:$0xff]   ;;  %v4129_v47 = vld [vmem:[#allocation10 + $0x70] ss:$8 sps:$4 sm:$0xff]  }
 0x355   :  { %v2189_v48 = vpop.f32.mrf.mxu1  ;;  %v2049_v8 = vadd.f32 %v3663_v5, %v3511_v6 }
 0x356   :  { %v2190_v52 = vadd.f32 %v3532_v36, %v2189_v48  ;;  %v2364_v55 = vsel %vm2363_vm5, %v2193_v50, %v3746_v25  ;;  %v4123_v36 = vld [vmem:[#allocation9 + $0x90] ss:$8 sps:$4 sm:$0xff]   ;;  %v4134_v48 = vld [vmem:[#allocation10 + $0x64] ss:$8 sps:$4 sm:$0xff]   ;;  %v4132_v50 = vld [vmem:[#allocation10 + $0x60] ss:$8 sps:$4 sm:$0xff]  }
 0x357   :  { %v3707_v46 = vpop.f32.mrf.mxu1  ;;  %v2053_v10 = vmax.f32 %v2049_v8, 0.0  ;;  %2834 = vmatpush2.bf16.msra.mxu0 %v4123_v36  ;;  %v4138_v25 = vld [vmem:[#allocation10 + $0x40] ss:$8 sps:$4 sm:$0xff]  }
 0x358   :  { %v2194_v54 = vmax.f32 %v2190_v52, 0.0  ;;  %2835 = vmatprep.subr.bf16.mxu0 %v4128_v39  ;;  %v4137_v52 = vld [vmem:[#allocation10 + $0x54] ss:$8 sps:$4 sm:$0xff]   ;;  %v4135_v46 = vld [vmem:[#allocation10 + $0x50] ss:$8 sps:$4 sm:$0xff]   ;;  %v4178_v36 = vld [vmem:[%s4809_s16 + $0x38] sm:$0xff]  }
 0x359   :  { %v2366_v12 = vpack.c.bf16 %v2053_v10, %v2052_v11  ;;  %v4179_v39 = vld [vmem:[%s4809_s16 + $0x70] sm:$0xff]  }
 0x35a   :  { %v2365_v56 = vsel %vm2363_vm5, %v2194_v54, %v3747_v53  ;;  %v4140_v53 = vld [vmem:[#allocation10 + $0x44] ss:$8 sps:$4 sm:$0xff]   ;;  %v4143_v54 = vld [vmem:[#allocation10 + $0x34] ss:$8 sps:$4 sm:$0xff]  }
 0x35b   :  { %v2383_v51 = vpack.c.bf16 %v2365_v56, %v2364_v55  ;;  %2836 = vmatpush2.bf16.msra.mxu0 %v4126_v43  ;;  %v4141_v55 = vld [vmem:[#allocation10 + $0x30] ss:$8 sps:$4 sm:$0xff]   ;;  %v4146_v56 = vld [vmem:[#allocation10 + $0x24] ss:$8 sps:$4 sm:$0xff]  }
 0x35c   :  { %3670 = vmatprep.subr.bf16.mxu0 %v4177_v35  ;;  %v4180_v43 = vld [vmem:[%s4809_s16 + $0x30] sm:$0xff]  }
 0x35d   :  { %3544 = vmatmul.mubr.msk.bf16.vlgmr.msra.gmra.mxu1 %vm2402_vm6, %v2383_v51  ;;  %v4149_v51 = vld [vmem:[#allocation10 + $0x14] ss:$8 sps:$4 sm:$0xff]  }
 0x35e   :  { %2537 = vmatpush1.bf16.msra.mxu1 %v4057_v37  ;;  %2568 = vmatprep.mubr.bf16.mxu1 %v4331_v0  ;;  %v4072_v0 = vld [vmem:[#allocation7 + $0x20] ss:$8 sps:$4 sm:$0xff]  }
 0x35f   :  { %2538 = vmatprep.subr.bf16.mxu1 %v4062_v15  ;;  %v4144_v37 = vld [vmem:[#allocation10 + $0x20] ss:$8 sps:$4 sm:$0xff]   ;;  %v4147_v15 = vld [vmem:[#allocation10 + $0x10] ss:$8 sps:$4 sm:$0xff]  }
 0x362   :  { %2539 = vmatpush1.bf16.msra.mxu1 %v4060_v31  ;;  %v4152_v31 = vld [vmem:[#allocation10 + $0x4] ss:$8 sps:$4 sm:$0xff]  }
 0x363   :  { %2540 = vmatprep.subr.bf16.mxu1 %v4065_v57  ;;  %v4150_v57 = vld [vmem:[#allocation10] ss:$8 sps:$4 sm:$0xff]  }
 0x366   :  { %2541 = vmatpush1.bf16.msra.mxu1 %v4063_v60  ;;  %v4153_v60 = vld [vmem:[#allocation10 + $0xf0] ss:$8 sps:$4 sm:$0xff]  }
 0x367   :  { %2542 = vmatprep.subr.bf16.mxu1 %v4068_v62  ;;  %v4158_v62 = vld [vmem:[#allocation10 + $0xe4] ss:$8 sps:$4 sm:$0xff]  }
 0x36a   :  { %2543 = vmatpush1.bf16.msra.mxu1 %v4066_v24  ;;  %v4161_v24 = vld [vmem:[#allocation10 + $0xd4] ss:$8 sps:$4 sm:$0xff]  }
 0x36b   :  { %2544 = vmatprep.subr.bf16.mxu1 %v4071_v1  ;;  %v4159_v1 = vld [vmem:[#allocation10 + $0xd0] ss:$8 sps:$4 sm:$0xff]  }
 0x36e   :  { %2545 = vmatpush1.bf16.msra.mxu1 %v4069_v2  ;;  %v4162_v2 = vld [vmem:[#allocation10 + $0xc0] ss:$8 sps:$4 sm:$0xff]  }
 0x36f   :  { %2546 = vmatprep.subr.bf16.mxu1 %v4074_v3  ;;  %v4167_v3 = vld [vmem:[#allocation10 + $0xb4] ss:$8 sps:$4 sm:$0xff]  }
 0x372   :  { %2547 = vmatpush1.bf16.msra.mxu1 %v4072_v0 }
 0x373   :  { %2548 = vmatprep.subr.bf16.mxu1 %v4077_v41 }
 0x376   :  { %2549 = vmatpush1.bf16.msra.mxu1 %v4075_v7  ;;  %v2579_v7 = vld [vmem:[%s4810_s17 + $0xc] sm:$0x3] }
 0x377   :  { %2550 = vmatprep.subr.bf16.mxu1 %v4080_v9  ;;  %v2588_v58 = vrot.slane %v2579_v7, %v4565_v42  ;;  %v2584_v10 = vrot.slane %v2579_v7, %v4570_v45 }
 0x37a   :  { %2551 = vmatpush1.bf16.msra.mxu1 %v4078_v61 }
 0x37b   :  { %3058 = vmatprep.subr.bf16.mxu1 %v4131_v23  ;;  %v4182_v23 = vld [vmem:[%s4809_s16 + $0x28] sm:$0xff]  }
 0x37d   :  { %2569 = vmatmul.mubr.bf16.vlgmr.msra.gmra.mxu1 %v2366_v12 }
 0x37e   :  { %3059 = vmatpush1.bf16.msra.mxu1 %v4129_v47  ;;  %v4181_v47 = vld [vmem:[%s4809_s16 + $0x68] sm:$0xff]  }
 0x37f   :  { %3060 = vmatprep.subr.bf16.mxu1 %v4134_v48  ;;  %v4183_v48 = vld [vmem:[%s4809_s16 + $0x60] sm:$0xff]  }
 0x382   :  { %3061 = vmatpush1.bf16.msra.mxu1 %v4132_v50  ;;  %v4184_v50 = vld [vmem:[%s4809_s16 + $0x20] sm:$0xff]  }
 0x383   :  { %3062 = vmatprep.subr.bf16.mxu1 %v4137_v52  ;;  %v4185_v52 = vld [vmem:[%s4809_s16 + $0x58] sm:$0xff]  }
 0x386   :  { %3063 = vmatpush1.bf16.msra.mxu1 %v4135_v46  ;;  %v4186_v46 = vld [vmem:[%s4809_s16 + $0x18] sm:$0xff]  }
 0x387   :  { %3064 = vmatprep.subr.bf16.mxu1 %v4140_v53  ;;  %v2633_v53 = vld [vmem:[%s4810_s17 + $0xe] sm:$0x3] }
 0x38a   :  { %3065 = vmatpush1.bf16.msra.mxu1 %v4138_v25 }
 0x38b   :  { %3066 = vmatprep.subr.bf16.mxu1 %v4143_v54  ;;  %v2642_v54 = vrot.slane %v2633_v53, %v4565_v42 }
 0x38e   :  { %3067 = vmatpush1.bf16.msra.mxu1 %v4141_v55  ;;  %v2638_v55 = vrot.slane %v2633_v53, %v4570_v45 }
 0x38f   :  { %3068 = vmatprep.subr.bf16.mxu1 %v4146_v56 }
 0x392   :  { %3069 = vmatpush1.bf16.msra.mxu1 %v4144_v37 }
 0x393   :  { %3070 = vmatprep.subr.bf16.mxu1 %v4149_v51 }
 0x396   :  { %3071 = vmatpush1.bf16.msra.mxu1 %v4147_v15 }
 0x397   :  { %3072 = vmatprep.subr.bf16.mxu1 %v4152_v31 }
 0x39a   :  { %3073 = vmatpush1.bf16.msra.mxu1 %v4150_v57 }
 0x39b   :  { %3074 = vmatprep.subr.bf16.mxu1 %v4155_v59 }
 0x39e   :  { %3075 = vmatpush2.bf16.msra.mxu1 %v4153_v60 }
 0x39f   :  { %3076 = vmatprep.subr.bf16.mxu1 %v4158_v62 }
 0x3a2   :  { %3077 = vmatpush2.bf16.msra.mxu1 %v4156_v63 }
 0x3a3   :  { %3078 = vmatprep.subr.bf16.mxu1 %v4161_v24 }
 0x3a6   :  { %3079 = vmatpush2.bf16.msra.mxu1 %v4159_v1 }
 0x3a7   :  { %3080 = vmatprep.subr.bf16.mxu1 %v4164_v40 }
 0x3aa   :  { %3081 = vmatpush2.bf16.msra.mxu1 %v4162_v2  ;;  %v4187_v2 = vld [vmem:[%s4809_s16 + $0x50] sm:$0xff]  }
 0x3ab   :  { %3082 = vmatprep.subr.bf16.mxu1 %v4167_v3  ;;  %v4188_v3 = vld [vmem:[%s4809_s16 + $0x10] sm:$0xff]  }
 0x3ae   :  { %3083 = vmatpush2.bf16.msra.mxu1 %v4165_v4  ;;  %v4189_v4 = vld [vmem:[%s4809_s16 + $0x48] sm:$0xff]  }
 0x3af   :  { %3084 = vmatprep.subr.bf16.mxu1 %v4170_v28 }
 0x3b2   :  { %3085 = vmatpush2.bf16.msra.mxu1 %v4168_v29 }
 0x3b3   :  { %3086 = vmatprep.subr.bf16.mxu1 %v4173_v30 }
 0x3b6   :  { %3087 = vmatpush2.bf16.msra.mxu1 %v4171_v32 }
 0x3b7   :  { %3088 = vmatprep.subr.bf16.mxu1 %v4176_v33 }
 0x3ba   :  { %3089 = vmatpush2.bf16.msra.mxu1 %v4174_v34 }
 0x41d   :  { %v2447_v0 = vpop.f32.mrf.mxu1 }
 0x41f   :  { %v2449_v5 = vpop.f32.mrf.mxu1 }
 0x421   :  { %v2451_v41 = vpop.f32.mrf.mxu1 }
 0x423   :  { %v2453_v44 = vpop.f32.mrf.mxu1 }
 0x43d   :  { %v2570_v6 = vpop.f32.mrf.mxu1 }
 0x43e   :  { %v2571_v61 = vadd.f32 %v2570_v6, %v2447_v0  ;;  %v4190_v0 = vld [vmem:[%s4809_s16 + $0x8] sm:$0xff]  }
 0x43f   :  { %v2572_v8 = vpop.f32.mrf.mxu1 }
 0x440   :  { %v2573_v9 = vadd.f32 %v2572_v8, %v2449_v5  ;;  %v2591_v49 = vadd.f32 %v2584_v10, %v2571_v61  ;;  %v4191_v5 = vld [vmem:[%s4809_s16 + $0x40] sm:$0xff]  }
 0x441   :  { %v2574_v11 = vpop.f32.mrf.mxu1 }
 0x442   :  { %v2575_v12 = vadd.f32 %v2574_v11, %v2451_v41  ;;  %v2592_v14 = vadd.f32 %v2588_v58, %v2573_v9  ;;  %v2595_v22 = vmax.f32 %v2591_v49, 0.0  ;;  %v4192_v41 = vld [vmem:[%s4809_s16] sm:$0xff]  }
 0x443   :  { %v2576_v13 = vpop.f32.mrf.mxu1 }
 0x444   :  { %v2593_v16 = vadd.f32 %v2584_v10, %v2575_v12  ;;  %v2577_v17 = vadd.f32 %v2576_v13, %v2453_v44  ;;  %v2596_v20 = vmax.f32 %v2592_v14, 0.0  ;;  %v2886_v44 = vld [vmem:[%s4810_s17 + $0x10] sm:$0x3] }
 0x445   :  { %v2895_v7 = vrot.slane %v2886_v44, %v4565_v42  ;;  %v2891_v8 = vrot.slane %v2886_v44, %v4570_v45  ;;  %v3625_v42 = vld [vmem:[%s4810_s17 + $0x12] ss:$0 sm:$0xff] }
 0x446   :  { %v2594_v19 = vadd.f32 %v2588_v58, %v2577_v17  ;;  %v2597_v18 = vmax.f32 %v2593_v16, 0.0 }
 0x448   :  { %v2598_v21 = vmax.f32 %v2594_v19, 0.0  ;;  %v2599_v27 = vpack.c.bf16 %v2597_v18, %v2595_v22  ;;  %v3284_v22 = vand.u32 127, %v1292_v38 }
 0x44a   :  { %v2600_v26 = vpack.c.bf16 %v2598_v21, %v2596_v20  ;;  %vm3285_vm7 = vcmp.eq.s32.totalorder %v3284_v22, 1 }
 0x44c   :  { %2837 = vmatprep.mubr.bf16.mxu0 %v2600_v26 }
 0x44d   :  { %2838 = vmatmul.mubr.bf16.vlgmr.msra.gmra.mxu0 %v2599_v27 }
 0x44e   :  { %3671 = vmatpush3.bf16.msra.mxu0 %v4178_v36 }
 0x44f   :  { %3672 = vmatprep.subr.bf16.mxu0 %v4179_v39 }
 0x452   :  { %3673 = vmatpush3.bf16.msra.mxu0 %v4180_v43 }
 0x453   :  { %3674 = vmatprep.subr.bf16.mxu0 %v4181_v47 }
 0x456   :  { %3675 = vmatpush3.bf16.msra.mxu0 %v4182_v23 }
 0x457   :  { %3676 = vmatprep.subr.bf16.mxu0 %v4183_v48 }
 0x45a   :  { %3677 = vmatpush3.bf16.msra.mxu0 %v4184_v50 }
 0x45b   :  { %3678 = vmatprep.subr.bf16.mxu0 %v4185_v52 }
 0x45e   :  { %3679 = vmatpush3.bf16.msra.mxu0 %v4186_v46 }
 0x45f   :  { %3680 = vmatprep.subr.bf16.mxu0 %v4187_v2 }
 0x462   :  { %3681 = vmatpush3.bf16.msra.mxu0 %v4188_v3 }
 0x463   :  { %3682 = vmatprep.subr.bf16.mxu0 %v4189_v4 }
 0x466   :  { %3683 = vmatpush3.bf16.msra.mxu0 %v4190_v0 }
 0x467   :  { %3684 = vmatprep.subr.bf16.mxu0 %v4191_v5 }
 0x46a   :  { %3685 = vmatpush3.bf16.msra.mxu0 %v4192_v41 }
 0x50d   :  { %v2839_v25 = vpop.f32.mrf.mxu0 }
 0x50e   :  { %v2840_v31 = vadd.f32 %v2839_v25, %v2638_v55 }
 0x50f   :  { %v2841_v56 = vpop.f32.mrf.mxu0 }
 0x510   :  { %v2842_v51 = vadd.f32 %v2841_v56, %v2642_v54  ;;  %v2848_v24 = vmax.f32 %v2840_v31, 0.0 }
 0x511   :  { %v2843_v37 = vpop.f32.mrf.mxu0 }
 0x512   :  { %v2844_v15 = vadd.f32 %v2843_v37, %v2638_v55  ;;  %v2849_v62 = vmax.f32 %v2842_v51, 0.0 }
 0x513   :  { %v2845_v57 = vpop.f32.mrf.mxu0 }
 0x514   :  { %v2846_v59 = vadd.f32 %v2845_v57, %v2642_v54  ;;  %v2850_v60 = vmax.f32 %v2844_v15, 0.0 }
 0x516   :  { %v2851_v63 = vmax.f32 %v2846_v59, 0.0  ;;  %v2852_v40 = vpack.c.bf16 %v2850_v60, %v2848_v24 }
 0x518   :  { %v2853_v1 = vpack.c.bf16 %v2851_v63, %v2849_v62 }
 0x51a   :  { %3090 = vmatprep.mubr.bf16.mxu1 %v2853_v1 }
 0x51b   :  { %3091 = vmatmul.mubr.bf16.vlgmr.msra.gmra.mxu1 %v2852_v40 }
 0x5db   :  { %v3092_v6 = vpop.f32.mrf.mxu1 }
 0x5dc   :  { %v3093_v11 = vadd.f32 %v3092_v6, %v2891_v8 }
 0x5dd   :  { %v3094_v9 = vpop.f32.mrf.mxu1 }
 0x5de   :  { %v3095_v61 = vadd.f32 %v3094_v9, %v2895_v7  ;;  %v3101_v49 = vmax.f32 %v3093_v11, 0.0 }
 0x5df   :  { %v3096_v58 = vpop.f32.mrf.mxu1 }
 0x5e0   :  { %v3097_v10 = vadd.f32 %v3096_v58, %v2891_v8  ;;  %v3102_v16 = vmax.f32 %v3095_v61, 0.0 }
 0x5e1   :  { %v3098_v12 = vpop.f32.mrf.mxu1 }
 0x5e2   :  { %v3099_v13 = vadd.f32 %v3098_v12, %v2895_v7  ;;  %v3103_v14 = vmax.f32 %v3097_v10, 0.0 }
 0x5e4   :  { %v3104_v17 = vmax.f32 %v3099_v13, 0.0  ;;  %v3105_v18 = vpack.c.bf16 %v3103_v14, %v3101_v49 }
 0x5e6   :  { %v3106_v19 = vpack.c.bf16 %v3104_v17, %v3102_v16 }
 0x5e8   :  { %3274 = vmatprep.mubr.bf16.mxu0 %v3106_v19 }
 0x5e9   :  { %3275 = vmatmul.mubr.bf16.vlgmr.msra.gmra.mxu0 %v3105_v18 }
 0x6a9   :  { %v3686_v20 = vpop.f32.mrf.mxu0 }
 0x6ab   :  { %v3687_v45 = vpop.f32.mrf.mxu0 }
 0x6ac   :  { %v3688_v21 = vadd.f32 %v3687_v45, %v3686_v20 }
 0x6ad   :  { %v3689_v26 = vpop.f32.mrf.mxu0 }
 0x6ae   :  { %v3277_v27 = vadd.f32 %v3688_v21, %v3625_v42 }
 0x6af   :  { %v3690_v28 = vpop.f32.mrf.mxu0 }
 0x6b0   :  { %v3286_v29 = vmax.f32 %v3277_v27, -20.0  ;;  %v3691_v30 = vadd.f32 %v3690_v28, %v3689_v26 }
 0x6b2   :  { %v3288_v32 = vmin.f32 %v3286_v29, 2.0  ;;  %v3280_v33 = vadd.f32 %v3691_v30, %v3625_v42 }
 0x6b4   :  { %v3290_v34 = vsel %vm3285_vm7, %v3288_v32, %v3277_v27  ;;  %v3287_v35 = vmax.f32 %v3280_v33, -20.0 }
 0x6b5   :  { %3293 = vst.msk [vmem:[%s4811_s18] sm:$0xff] %vm3292_vm8, %v3290_v34 }
 0x6b6   :  { %v3289_v36 = vmin.f32 %v3287_v35, 2.0 }
 0x6b8   :  { %v3291_v39 = vsel %vm3285_vm7, %v3289_v36, %v3280_v33 }
 0x6b9   :  { %3294 = vst.msk [vmem:[%s4811_s18 + $0x8] sm:$0xff] %vm3292_vm8, %v3291_v39 }
 0x6ba   :  { %3299 = vsyncpa [#allocation3], 1 }
 0x6bb   :  { %3300 = vsyncpa [#allocation5], 1 }
 0x6bc   :  { %3301 = vsyncpa [#allocation8], 1 }
 0x6bd   :  { %3302 = vsyncpa [#allocation11], 1 }

</bundles_post_ra>
